<compile_context>
chip_gen: v6e
topology: v6e:2x2x1
jax: 0.10.0
libtpu: 0.0.40
codegen_flags: <defaults>
</compile_context>

<pallas_src>
import functools

import jax
import jax.numpy as jnp
from jax.experimental import pallas as pl
from jax.experimental.pallas import tpu as pltpu


def _sed_kernel(x_ref, halo_ref, wband_ref, bconv_ref, whead_ref, bhead_ref,
                ypred_ref, weak_ref, m_sc, l_sc, a_sc,
                *, bB, tT, F, Hp, Cp, fblk):
    ti = pl.program_id(1)
    nT = pl.num_programs(1)
    M = bB * tT
    bf16 = jnp.bfloat16

    # ---- inputs for this (batch-block, time-tile) ----
    x = x_ref[...]                                       # [bB, tT, F]  f32
    hal = halo_ref[...]                                  # [bB, 2, F]   f32 (halo rows)
    top = hal[:, 0:1, :]                                 # row  ti*tT - 1  (zeros at ti==0)
    bot = hal[:, 1:2, :]                                 # row (ti+1)*tT   (zeros at last ti)

    # Time-shifted slabs for conv taps dt = -1, 0, +1 (sublane shifts only).
    slab_m1 = jnp.concatenate([top, x[:, :tT - 1, :]], axis=1)   # [bB, tT, F]
    slab_p1 = jnp.concatenate([x[:, 1:, :], bot], axis=1)        # [bB, tT, F]
    slabs = tuple(s.reshape(M, F).astype(bf16) for s in (slab_m1, x, slab_p1))

    # ---- encoder: banded conv (MXU) + bias + ReLU + freq-mean, chunked over f_out ----
    # Only a [M, fblk*Hp] intermediate is ever live; it is reduced into the [M, Hp]
    # h-accumulator immediately (no [M, F*Hp] spill, no F-long add chain).
    n_chunks = F // fblk
    h_acc = jnp.zeros((M, Hp), jnp.float32)
    for c in range(n_chunks):
        lo = c * fblk * Hp
        hi = lo + fblk * Hp
        acc = jnp.dot(slabs[0], wband_ref[0, :, lo:hi],
                      preferred_element_type=jnp.float32)
        acc = acc + jnp.dot(slabs[1], wband_ref[1, :, lo:hi],
                            preferred_element_type=jnp.float32)
        acc = acc + jnp.dot(slabs[2], wband_ref[2, :, lo:hi],
                            preferred_element_type=jnp.float32)
        acc = jnp.maximum(acc + bconv_ref[:, lo:hi], 0.0)         # [M, fblk*Hp]
        for f in range(fblk):                                     # 128-lane aligned slices
            h_acc = h_acc + acc[:, f * Hp:(f + 1) * Hp]
    h = (h_acc * (1.0 / F)).astype(bf16)                          # [M, Hp]

    # ---- fused strong + weak heads: single [Hp, 2*Cp] matmul ----
    lg = jnp.dot(h, whead_ref[...],
                 preferred_element_type=jnp.float32) + bhead_ref[...]   # [M, 2Cp]
    ls = lg[:, 0:Cp]                                     # strong logits
    la = lg[:, Cp:2 * Cp]                                # attention (weak) logits
    y = pl.reciprocal(1.0 + jnp.exp(-ls), approx=True)   # sigmoid (exp + rcp on EUP)

    y3 = y.reshape(bB, tT, Cp)
    la3 = la.reshape(bB, tT, Cp)
    ypred_ref[...] = y3.astype(ypred_ref.dtype)          # lane-dense bf16 store

    # ---- weak head: online-softmax attention pooling across time tiles ----
    @pl.when(ti == 0)
    def _():
        m_sc[...] = jnp.full((bB, 1, Cp), -jnp.inf, jnp.float32)
        l_sc[...] = jnp.zeros((bB, 1, Cp), jnp.float32)
        a_sc[...] = jnp.zeros((bB, 1, Cp), jnp.float32)

    m_prev = m_sc[...]
    m_new = jnp.maximum(m_prev, jnp.max(la3, axis=1, keepdims=True))
    alpha = jnp.exp(m_prev - m_new)
    p = jnp.exp(la3 - m_new)                             # [bB, tT, Cp]
    l_sc[...] = alpha * l_sc[...] + jnp.sum(p, axis=1, keepdims=True)
    a_sc[...] = alpha * a_sc[...] + jnp.sum(p * y3, axis=1, keepdims=True)
    m_sc[...] = m_new

    @pl.when(ti == nT - 1)
    def _():
        weak_ref[...] = (a_sc[...] *
                         pl.reciprocal(l_sc[...], approx=True)).astype(weak_ref.dtype)


def init_params(key, H, C):
    k0, k1, k2, k3 = jax.random.split(key, 4)
    return {
        "w_conv": 0.1 * jax.random.normal(k0, (3, 3, H), jnp.float32),   # [dt, df, H]
        "b_conv": jnp.zeros((H,), jnp.float32),
        "w_strong": 0.1 * jax.random.normal(k1, (H, C), jnp.float32),
        "b_strong": 0.01 * jax.random.normal(k2, (C,), jnp.float32),
        "w_weak": 0.1 * jax.random.normal(k3, (H, C), jnp.float32),
        "b_weak": jnp.zeros((C,), jnp.float32),
    }


def pack_params(params, F, Hp=128, Cp=128):
    """One-time packing of module parameters for the kernel (call once, reuse)."""
    f32, bf16 = jnp.float32, jnp.bfloat16
    H = params["w_conv"].shape[2]
    C = params["w_strong"].shape[1]

    # Banded conv weight per time tap:
    #   wband[dt, f_in, f_out*Hp + h] = w_conv[dt, f_in - f_out + 1, h]  (0 outside band)
    # i.e. the 'same' frequency zero-padding is folded into the weight.
    wc_p = jnp.pad(params["w_conv"].astype(f32), ((0, 0), (0, 0), (0, Hp - H)))  # [3,3,Hp]
    f_in = jnp.arange(F)[:, None]
    f_out = jnp.arange(F)[None, :]
    j = f_in - f_out + 1
    valid = (j >= 0) & (j <= 2)
    wband = jnp.where(valid[None, :, :, None], wc_p[:, jnp.clip(j, 0, 2), :], 0.0)
    wband = wband.reshape(3, F, F * Hp).astype(bf16)                      # bf16 MXU operand
    bconv = jnp.tile(jnp.pad(params["b_conv"].astype(f32), (0, Hp - H)), F)[None, :]

    ws = jnp.zeros((Hp, Cp), f32).at[:H, :C].set(params["w_strong"].astype(f32))
    wa = jnp.zeros((Hp, Cp), f32).at[:H, :C].set(params["w_weak"].astype(f32))
    whead = jnp.concatenate([ws, wa], axis=1).astype(bf16)                # [Hp, 2Cp] bf16
    bs = jnp.zeros((Cp,), f32).at[:C].set(params["b_strong"].astype(f32))
    bw = jnp.zeros((Cp,), f32).at[:C].set(params["b_weak"].astype(f32))
    bhead = jnp.concatenate([bs, bw])[None, :]                            # [1, 2Cp] f32

    return {"wband": wband, "bconv": bconv, "whead": whead, "bhead": bhead,
            "H": H, "C": C}


def strong_weak_sed(feats, packed, output_weak=False, *, tile_t=32, batch_block=None,
                    f_block=8, vmem_limit_mb=48):
    f32 = jnp.float32
    mel = feats["mel"]                                 # [B, 1, T, F]  (NCHW)
    B, Cin, T, F = mel.shape
    assert Cin == 1
    x = mel[:, 0].astype(f32)                          # [B, T, F]

    C = packed["C"]
    Hp, Cp = 128, 128                                  # lane-padded channel dims

    tT = min(tile_t, T)                                # roughly halve on v7x at prod sizes
    assert T % tT == 0, "T must be divisible by the time tile"
    nT = T // tT
    bB = B if batch_block is None else batch_block     # v7x megacore: use B // 2
    assert B % bB == 0, "B must be divisible by batch_block"
    nB = B // bB
    fblk = min(f_block, F)                             # f_out chunk of the banded conv
    assert F % fblk == 0, "F must be divisible by f_block"

    # 1-frame time halo rows per tile (avoids a full-mel pad in HBM).
    zrow = jnp.zeros((B, 1, F), f32)
    top = jnp.concatenate([zrow, x[:, tT - 1::tT, :][:, :nT - 1, :]], axis=1)   # [B, nT, F]
    bot = jnp.concatenate([x[:, tT::tT, :], zrow], axis=1)                      # [B, nT, F]
    halos = jnp.stack([top, bot], axis=2)                                       # [B, nT, 2, F]

    kernel = functools.partial(_sed_kernel, bB=bB, tT=tT, F=F, Hp=Hp, Cp=Cp, fblk=fblk)
    single_buf = pl.Buffered(1)                        # grid-invariant weights: 1 buffer

    y_p, weak_p = pl.pallas_call(
        kernel,
        out_shape=(
            jax.ShapeDtypeStruct((B, T, Cp), jnp.bfloat16),   # lane-dense, halved writeback
            jax.ShapeDtypeStruct((B, 1, Cp), f32),
        ),
        grid=(nB, nT),
        in_specs=[
            pl.BlockSpec((bB, tT, F), lambda bi, ti: (bi, ti, 0)),
            pl.BlockSpec((bB, None, 2, F), lambda bi, ti: (bi, ti, 0, 0)),
            pl.BlockSpec((3, F, F * Hp), lambda bi, ti: (0, 0, 0),
                         pipeline_mode=single_buf),
            pl.BlockSpec((1, F * Hp), lambda bi, ti: (0, 0),
                         pipeline_mode=single_buf),
            pl.BlockSpec((Hp, 2 * Cp), lambda bi, ti: (0, 0),
                         pipeline_mode=single_buf),
            pl.BlockSpec((1, 2 * Cp), lambda bi, ti: (0, 0),
                         pipeline_mode=single_buf),
        ],
        out_specs=(
            pl.BlockSpec((bB, tT, Cp), lambda bi, ti: (bi, ti, 0)),
            pl.BlockSpec((bB, 1, Cp), lambda bi, ti: (bi, 0, 0)),
        ),
        scratch_shapes=[
            pltpu.VMEM((bB, 1, Cp), f32),   # running max (online softmax)
            pltpu.VMEM((bB, 1, Cp), f32),   # running denominator
            pltpu.VMEM((bB, 1, Cp), f32),   # running attention-weighted y_pred
        ],
        compiler_params=pltpu.CompilerParams(
            dimension_semantics=("parallel", "arbitrary"),
            vmem_limit_bytes=vmem_limit_mb << 20),
    )(x, halos, packed["wband"], packed["bconv"], packed["whead"], packed["bhead"])

    y_pred = y_p[:, :, :C].astype(f32)                 # slice lane padding, restore f32
    weak = weak_p[:, 0, :C]
    if output_weak:
        return y_pred, weak
    return y_pred


def _reference(feats, params):
    """Pure-JAX f32 reference of the same forward pass (for validation)."""
    x = feats["mel"][:, 0]
    B, T, F = x.shape
    xpad = jnp.pad(x, ((0, 0), (1, 1), (1, 1)))
    H = params["w_conv"].shape[2]
    conv = jnp.zeros((B, T, F, H), jnp.float32)
    for i in range(3):
        for j in range(3):
            conv = conv + (xpad[:, i:i + T, j:j + F][..., None]
                           * params["w_conv"][i, j][None, None, None, :])
    conv = jnp.maximum(conv + params["b_conv"], 0.0)
    h = jnp.mean(conv, axis=2)                          # [B, T, H]
    y = jax.nn.sigmoid(h @ params["w_strong"] + params["b_strong"])
    att = jax.nn.softmax(h @ params["w_weak"] + params["b_weak"], axis=1)
    weak = jnp.sum(att * y, axis=1)
    return y, weak


if __name__ == "__main__":
    key = jax.random.PRNGKey(0)
    k_mel, k_par = jax.random.split(key)

    B, T, F = 2, 64, 16
    H, C = 32, 8

    feats = {"mel": jax.random.normal(k_mel, (B, 1, T, F), jnp.float32)}
    params = init_params(k_par, H, C)
    packed = pack_params(params, F)          # one-time packing (not per forward call)

    # batch_block=1 exercises the parallel batch axis (v7x megacore sharding);
    # tile_t=32 exercises the online-softmax accumulation across two time tiles.
    y_pred, y_weak = strong_weak_sed(feats, packed, output_weak=True,
                                     tile_t=32, batch_block=1)
    y_pred = jax.block_until_ready(y_pred)
    y_weak = jax.block_until_ready(y_weak)

    y_ref, w_ref = _reference(feats, params)
    assert y_pred.shape == (B, T, C) and y_weak.shape == (B, C)

    # 2e-2 tolerance: bf16 MXU operands + approx EUP reciprocal/sigmoid + bf16 writeback.
    err_y = float(jnp.max(jnp.abs(y_pred - y_ref)))
    err_w = float(jnp.max(jnp.abs(y_weak - w_ref)))
    assert err_y < 2e-2, f"y_pred max abs err {err_y}"
    assert err_w < 2e-2, f"weak max abs err {err_w}"

    print("KERNEL_OK")
</pallas_src>

<mosaic_0001>
module attributes {stable_mosaic.version = 11 : i64} {
  func.func @_sed_kernel(%arg0: i32, %arg1: i32, %arg2: memref<1x32x16xf32, #tpu.memory_space<vmem>>, %arg3: memref<1x1x2x16xf32, #tpu.memory_space<vmem>>, %arg4: memref<3x16x2048xbf16, #tpu.memory_space<vmem>>, %arg5: memref<1x2048xf32, #tpu.memory_space<vmem>>, %arg6: memref<128x256xbf16, #tpu.memory_space<vmem>>, %arg7: memref<1x256xf32, #tpu.memory_space<vmem>>, %arg8: memref<1x32x128xbf16, #tpu.memory_space<vmem>>, %arg9: memref<1x1x128xf32, #tpu.memory_space<vmem>>, %arg10: memref<1x1x128xf32, #tpu.memory_space<vmem>>, %arg11: memref<1x1x128xf32, #tpu.memory_space<vmem>>, %arg12: memref<1x1x128xf32, #tpu.memory_space<vmem>>) attributes {dimension_semantics = [#tpu.dimension_semantics<parallel>, #tpu.dimension_semantics<arbitrary>], iteration_bounds = array<i64: 2, 2>, scalar_prefetch = 0 : i64, scratch_operands = 3 : i64, tpu.core_type = #tpu.core_type<tc>, window_params = [{transform_indices = @transform_0, window_bounds = array<i64: 1, 32, 16>}, {transform_indices = @transform_1, window_bounds = array<i64: 1, 1, 2, 16>}, {pipeline_mode = #tpu.pipeline_mode<synchronous>, transform_indices = @transform_2, window_bounds = array<i64: 3, 16, 2048>}, {pipeline_mode = #tpu.pipeline_mode<synchronous>, transform_indices = @transform_3, window_bounds = array<i64: 1, 2048>}, {pipeline_mode = #tpu.pipeline_mode<synchronous>, transform_indices = @transform_4, window_bounds = array<i64: 128, 256>}, {pipeline_mode = #tpu.pipeline_mode<synchronous>, transform_indices = @transform_5, window_bounds = array<i64: 1, 256>}, {transform_indices = @transform_6, window_bounds = array<i64: 1, 32, 128>}, {transform_indices = @transform_7, window_bounds = array<i64: 1, 1, 128>}]} {
    %c0 = arith.constant 0 : index
    %c0_0 = arith.constant 0 : index
    %c0_1 = arith.constant 0 : index
    %0 = vector.load %arg2[%c0, %c0_0, %c0_1] : memref<1x32x16xf32, #tpu.memory_space<vmem>>, vector<1x32x16xf32>
    %c0_2 = arith.constant 0 : index
    %c0_3 = arith.constant 0 : index
    %c0_4 = arith.constant 0 : index
    %c0_5 = arith.constant 0 : index
    %1 = vector.load %arg3[%c0_2, %c0_3, %c0_4, %c0_5] : memref<1x1x2x16xf32, #tpu.memory_space<vmem>>, vector<1x1x2x16xf32>
    %2 = vector.shape_cast %1 : vector<1x1x2x16xf32> to vector<1x2x16xf32>
    %3 = vector.extract_strided_slice %2 {offsets = [0, 0, 0], sizes = [1, 1, 16], strides = [1, 1, 1]} : vector<1x2x16xf32> to vector<1x1x16xf32>
    %4 = vector.extract_strided_slice %2 {offsets = [0, 1, 0], sizes = [1, 1, 16], strides = [1, 1, 1]} : vector<1x2x16xf32> to vector<1x1x16xf32>
    %5 = vector.extract_strided_slice %0 {offsets = [0, 0, 0], sizes = [1, 31, 16], strides = [1, 1, 1]} : vector<1x32x16xf32> to vector<1x31x16xf32>
    %6 = tpu.concatenate %3, %5 in 1 : vector<1x1x16xf32>, vector<1x31x16xf32> -> vector<1x32x16xf32>
    %7 = vector.extract_strided_slice %0 {offsets = [0, 1, 0], sizes = [1, 31, 16], strides = [1, 1, 1]} : vector<1x32x16xf32> to vector<1x31x16xf32>
    %8 = tpu.concatenate %7, %4 in 1 : vector<1x31x16xf32>, vector<1x1x16xf32> -> vector<1x32x16xf32>
    %9 = vector.shape_cast %6 : vector<1x32x16xf32> to vector<32x16xf32>
    %10 = arith.truncf %9 : vector<32x16xf32> to vector<32x16xbf16>
    %11 = vector.shape_cast %0 : vector<1x32x16xf32> to vector<32x16xf32>
    %12 = arith.truncf %11 : vector<32x16xf32> to vector<32x16xbf16>
    %13 = vector.shape_cast %8 : vector<1x32x16xf32> to vector<32x16xf32>
    %14 = arith.truncf %13 : vector<32x16xf32> to vector<32x16xbf16>
    %cst = arith.constant 0.000000e+00 : f32
    %15 = vector.broadcast %cst : f32 to vector<32x128xf32>
    %c0_6 = arith.constant 0 : index
    %c0_7 = arith.constant 0 : index
    %c0_8 = arith.constant 0 : index
    %16 = vector.load %arg4[%c0_6, %c0_7, %c0_8] : memref<3x16x2048xbf16, #tpu.memory_space<vmem>>, vector<1x16x1024xbf16>
    %17 = vector.shape_cast %16 : vector<1x16x1024xbf16> to vector<16x1024xbf16>
    %cst_9 = arith.constant dense<0.000000e+00> : vector<32x1024xf32>
    %18 = tpu.matmul %10, %17, %cst_9 {dimension_numbers = #tpu.dot_dimension_numbers<[1], [0], [0], [1], [0, 0, 1, 1], [], []>} : vector<32x16xbf16>, vector<16x1024xbf16>, vector<32x1024xf32> -> vector<32x1024xf32>
    %c1 = arith.constant 1 : index
    %c0_10 = arith.constant 0 : index
    %c0_11 = arith.constant 0 : index
    %19 = vector.load %arg4[%c1, %c0_10, %c0_11] : memref<3x16x2048xbf16, #tpu.memory_space<vmem>>, vector<1x16x1024xbf16>
    %20 = vector.shape_cast %19 : vector<1x16x1024xbf16> to vector<16x1024xbf16>
    %cst_12 = arith.constant dense<0.000000e+00> : vector<32x1024xf32>
    %21 = tpu.matmul %12, %20, %cst_12 {dimension_numbers = #tpu.dot_dimension_numbers<[1], [0], [0], [1], [0, 0, 1, 1], [], []>} : vector<32x16xbf16>, vector<16x1024xbf16>, vector<32x1024xf32> -> vector<32x1024xf32>
    %22 = arith.addf %18, %21 : vector<32x1024xf32>
    %c2 = arith.constant 2 : index
    %c0_13 = arith.constant 0 : index
    %c0_14 = arith.constant 0 : index
    %23 = vector.load %arg4[%c2, %c0_13, %c0_14] : memref<3x16x2048xbf16, #tpu.memory_space<vmem>>, vector<1x16x1024xbf16>
    %24 = vector.shape_cast %23 : vector<1x16x1024xbf16> to vector<16x1024xbf16>
    %cst_15 = arith.constant dense<0.000000e+00> : vector<32x1024xf32>
    %25 = tpu.matmul %14, %24, %cst_15 {dimension_numbers = #tpu.dot_dimension_numbers<[1], [0], [0], [1], [0, 0, 1, 1], [], []>} : vector<32x16xbf16>, vector<16x1024xbf16>, vector<32x1024xf32> -> vector<32x1024xf32>
    %26 = arith.addf %22, %25 : vector<32x1024xf32>
    %c0_16 = arith.constant 0 : index
    %c0_17 = arith.constant 0 : index
    %27 = vector.load %arg5[%c0_16, %c0_17] : memref<1x2048xf32, #tpu.memory_space<vmem>>, vector<1x1024xf32>
    %28 = vector.broadcast %27 : vector<1x1024xf32> to vector<32x1024xf32>
    %29 = arith.addf %26, %28 : vector<32x1024xf32>
    %cst_18 = arith.constant 0.000000e+00 : f32
    %30 = vector.broadcast %cst_18 : f32 to vector<32x1024xf32>
    %31 = arith.maximumf %29, %30 : vector<32x1024xf32>
    %32 = vector.extract_strided_slice %31 {offsets = [0, 0], sizes = [32, 128], strides = [1, 1]} : vector<32x1024xf32> to vector<32x128xf32>
    %33 = arith.addf %15, %32 : vector<32x128xf32>
    %34 = vector.extract_strided_slice %31 {offsets = [0, 128], sizes = [32, 128], strides = [1, 1]} : vector<32x1024xf32> to vector<32x128xf32>
    %35 = arith.addf %33, %34 : vector<32x128xf32>
    %36 = vector.extract_strided_slice %31 {offsets = [0, 256], sizes = [32, 128], strides = [1, 1]} : vector<32x1024xf32> to vector<32x128xf32>
    %37 = arith.addf %35, %36 : vector<32x128xf32>
    %38 = vector.extract_strided_slice %31 {offsets = [0, 384], sizes = [32, 128], strides = [1, 1]} : vector<32x1024xf32> to vector<32x128xf32>
    %39 = arith.addf %37, %38 : vector<32x128xf32>
    %40 = vector.extract_strided_slice %31 {offsets = [0, 512], sizes = [32, 128], strides = [1, 1]} : vector<32x1024xf32> to vector<32x128xf32>
    %41 = arith.addf %39, %40 : vector<32x128xf32>
    %42 = vector.extract_strided_slice %31 {offsets = [0, 640], sizes = [32, 128], strides = [1, 1]} : vector<32x1024xf32> to vector<32x128xf32>
    %43 = arith.addf %41, %42 : vector<32x128xf32>
    %44 = vector.extract_strided_slice %31 {offsets = [0, 768], sizes = [32, 128], strides = [1, 1]} : vector<32x1024xf32> to vector<32x128xf32>
    %45 = arith.addf %43, %44 : vector<32x128xf32>
    %46 = vector.extract_strided_slice %31 {offsets = [0, 896], sizes = [32, 128], strides = [1, 1]} : vector<32x1024xf32> to vector<32x128xf32>
    %47 = arith.addf %45, %46 : vector<32x128xf32>
    %c0_19 = arith.constant 0 : index
    %c0_20 = arith.constant 0 : index
    %c1024 = arith.constant 1024 : index
    %48 = vector.load %arg4[%c0_19, %c0_20, %c1024] : memref<3x16x2048xbf16, #tpu.memory_space<vmem>>, vector<1x16x1024xbf16>
    %49 = vector.shape_cast %48 : vector<1x16x1024xbf16> to vector<16x1024xbf16>
    %cst_21 = arith.constant dense<0.000000e+00> : vector<32x1024xf32>
    %50 = tpu.matmul %10, %49, %cst_21 {dimension_numbers = #tpu.dot_dimension_numbers<[1], [0], [0], [1], [0, 0, 1, 1], [], []>} : vector<32x16xbf16>, vector<16x1024xbf16>, vector<32x1024xf32> -> vector<32x1024xf32>
    %c1_22 = arith.constant 1 : index
    %c0_23 = arith.constant 0 : index
    %c1024_24 = arith.constant 1024 : index
    %51 = vector.load %arg4[%c1_22, %c0_23, %c1024_24] : memref<3x16x2048xbf16, #tpu.memory_space<vmem>>, vector<1x16x1024xbf16>
    %52 = vector.shape_cast %51 : vector<1x16x1024xbf16> to vector<16x1024xbf16>
    %cst_25 = arith.constant dense<0.000000e+00> : vector<32x1024xf32>
    %53 = tpu.matmul %12, %52, %cst_25 {dimension_numbers = #tpu.dot_dimension_numbers<[1], [0], [0], [1], [0, 0, 1, 1], [], []>} : vector<32x16xbf16>, vector<16x1024xbf16>, vector<32x1024xf32> -> vector<32x1024xf32>
    %54 = arith.addf %50, %53 : vector<32x1024xf32>
    %c2_26 = arith.constant 2 : index
    %c0_27 = arith.constant 0 : index
    %c1024_28 = arith.constant 1024 : index
    %55 = vector.load %arg4[%c2_26, %c0_27, %c1024_28] : memref<3x16x2048xbf16, #tpu.memory_space<vmem>>, vector<1x16x1024xbf16>
    %56 = vector.shape_cast %55 : vector<1x16x1024xbf16> to vector<16x1024xbf16>
    %cst_29 = arith.constant dense<0.000000e+00> : vector<32x1024xf32>
    %57 = tpu.matmul %14, %56, %cst_29 {dimension_numbers = #tpu.dot_dimension_numbers<[1], [0], [0], [1], [0, 0, 1, 1], [], []>} : vector<32x16xbf16>, vector<16x1024xbf16>, vector<32x1024xf32> -> vector<32x1024xf32>
    %58 = arith.addf %54, %57 : vector<32x1024xf32>
    %c0_30 = arith.constant 0 : index
    %c1024_31 = arith.constant 1024 : index
    %59 = vector.load %arg5[%c0_30, %c1024_31] : memref<1x2048xf32, #tpu.memory_space<vmem>>, vector<1x1024xf32>
    %60 = vector.broadcast %59 : vector<1x1024xf32> to vector<32x1024xf32>
    %61 = arith.addf %58, %60 : vector<32x1024xf32>
    %cst_32 = arith.constant 0.000000e+00 : f32
    %62 = vector.broadcast %cst_32 : f32 to vector<32x1024xf32>
    %63 = arith.maximumf %61, %62 : vector<32x1024xf32>
    %64 = vector.extract_strided_slice %63 {offsets = [0, 0], sizes = [32, 128], strides = [1, 1]} : vector<32x1024xf32> to vector<32x128xf32>
    %65 = arith.addf %47, %64 : vector<32x128xf32>
    %66 = vector.extract_strided_slice %63 {offsets = [0, 128], sizes = [32, 128], strides = [1, 1]} : vector<32x1024xf32> to vector<32x128xf32>
    %67 = arith.addf %65, %66 : vector<32x128xf32>
    %68 = vector.extract_strided_slice %63 {offsets = [0, 256], sizes = [32, 128], strides = [1, 1]} : vector<32x1024xf32> to vector<32x128xf32>
    %69 = arith.addf %67, %68 : vector<32x128xf32>
    %70 = vector.extract_strided_slice %63 {offsets = [0, 384], sizes = [32, 128], strides = [1, 1]} : vector<32x1024xf32> to vector<32x128xf32>
    %71 = arith.addf %69, %70 : vector<32x128xf32>
    %72 = vector.extract_strided_slice %63 {offsets = [0, 512], sizes = [32, 128], strides = [1, 1]} : vector<32x1024xf32> to vector<32x128xf32>
    %73 = arith.addf %71, %72 : vector<32x128xf32>
    %74 = vector.extract_strided_slice %63 {offsets = [0, 640], sizes = [32, 128], strides = [1, 1]} : vector<32x1024xf32> to vector<32x128xf32>
    %75 = arith.addf %73, %74 : vector<32x128xf32>
    %76 = vector.extract_strided_slice %63 {offsets = [0, 768], sizes = [32, 128], strides = [1, 1]} : vector<32x1024xf32> to vector<32x128xf32>
    %77 = arith.addf %75, %76 : vector<32x128xf32>
    %78 = vector.extract_strided_slice %63 {offsets = [0, 896], sizes = [32, 128], strides = [1, 1]} : vector<32x1024xf32> to vector<32x128xf32>
    %79 = arith.addf %77, %78 : vector<32x128xf32>
    %cst_33 = arith.constant 6.250000e-02 : f32
    %80 = vector.broadcast %cst_33 : f32 to vector<32x128xf32>
    %81 = arith.mulf %79, %80 : vector<32x128xf32>
    %82 = arith.truncf %81 : vector<32x128xf32> to vector<32x128xbf16>
    %c0_34 = arith.constant 0 : index
    %c0_35 = arith.constant 0 : index
    %83 = vector.load %arg6[%c0_34, %c0_35] : memref<128x256xbf16, #tpu.memory_space<vmem>>, vector<128x256xbf16>
    %cst_36 = arith.constant dense<0.000000e+00> : vector<32x256xf32>
    %84 = tpu.matmul %82, %83, %cst_36 {dimension_numbers = #tpu.dot_dimension_numbers<[1], [0], [0], [1], [0, 0, 1, 1], [], []>} : vector<32x128xbf16>, vector<128x256xbf16>, vector<32x256xf32> -> vector<32x256xf32>
    %c0_37 = arith.constant 0 : index
    %c0_38 = arith.constant 0 : index
    %85 = vector.load %arg7[%c0_37, %c0_38] : memref<1x256xf32, #tpu.memory_space<vmem>>, vector<1x256xf32>
    %86 = vector.broadcast %85 : vector<1x256xf32> to vector<32x256xf32>
    %87 = arith.addf %84, %86 : vector<32x256xf32>
    %88 = vector.extract_strided_slice %87 {offsets = [0, 0], sizes = [32, 128], strides = [1, 1]} : vector<32x256xf32> to vector<32x128xf32>
    %89 = vector.extract_strided_slice %87 {offsets = [0, 128], sizes = [32, 128], strides = [1, 1]} : vector<32x256xf32> to vector<32x128xf32>
    %cst_39 = arith.constant 0.000000e+00 : f32
    %90 = vector.broadcast %cst_39 : f32 to vector<32x128xf32>
    %91 = arith.subf %90, %88 : vector<32x128xf32>
    %92 = math.exp %91 : vector<32x128xf32>
    %cst_40 = arith.constant 1.000000e+00 : f32
    %93 = vector.broadcast %cst_40 : f32 to vector<32x128xf32>
    %94 = arith.addf %93, %92 : vector<32x128xf32>
    %95 = tpu.reciprocal %94 {approx = true} : vector<32x128xf32> -> vector<32x128xf32>
    %96 = vector.shape_cast %95 : vector<32x128xf32> to vector<1x32x128xf32>
    %97 = vector.shape_cast %89 : vector<32x128xf32> to vector<1x32x128xf32>
    %98 = arith.truncf %96 : vector<1x32x128xf32> to vector<1x32x128xbf16>
    %c0_41 = arith.constant 0 : index
    %c0_42 = arith.constant 0 : index
    %c0_43 = arith.constant 0 : index
    %99 = vector.load %arg8[%c0_41, %c0_42, %c0_43] : memref<1x32x128xbf16, #tpu.memory_space<vmem>>, vector<1x32x128xbf16>
    tpu.vector_store %arg8[%c0_41, %c0_42, %c0_43], %98 {strides = array<i32>} : memref<1x32x128xbf16, #tpu.memory_space<vmem>>, vector<1x32x128xbf16>,
    %c0_i32 = arith.constant 0 : i32
    %100 = arith.cmpi eq, %arg1, %c0_i32 : i32
    %101 = arith.extui %100 : i1 to i32
    %c0_i32_44 = arith.constant 0 : i32
    %102 = arith.cmpi ne, %101, %c0_i32_44 : i32
    scf.if %102 {
      %cst_67 = arith.constant 0xFF800000 : f32
      %129 = vector.broadcast %cst_67 : f32 to vector<1x1x128xf32>
      %c0_68 = arith.constant 0 : index
      %c0_69 = arith.constant 0 : index
      %c0_70 = arith.constant 0 : index
      %130 = vector.load %arg10[%c0_68, %c0_69, %c0_70] : memref<1x1x128xf32, #tpu.memory_space<vmem>>, vector<1x1x128xf32>
      tpu.vector_store %arg10[%c0_68, %c0_69, %c0_70], %129 {strides = array<i32>} : memref<1x1x128xf32, #tpu.memory_space<vmem>>, vector<1x1x128xf32>,
      %cst_71 = arith.constant 0.000000e+00 : f32
      %131 = vector.broadcast %cst_71 : f32 to vector<1x1x128xf32>
      %c0_72 = arith.constant 0 : index
      %c0_73 = arith.constant 0 : index
      %c0_74 = arith.constant 0 : index
      %132 = vector.load %arg11[%c0_72, %c0_73, %c0_74] : memref<1x1x128xf32, #tpu.memory_space<vmem>>, vector<1x1x128xf32>
      tpu.vector_store %arg11[%c0_72, %c0_73, %c0_74], %131 {strides = array<i32>} : memref<1x1x128xf32, #tpu.memory_space<vmem>>, vector<1x1x128xf32>,
      %cst_75 = arith.constant 0.000000e+00 : f32
      %133 = vector.broadcast %cst_75 : f32 to vector<1x1x128xf32>
      %c0_76 = arith.constant 0 : index
      %c0_77 = arith.constant 0 : index
      %c0_78 = arith.constant 0 : index
      %134 = vector.load %arg12[%c0_76, %c0_77, %c0_78] : memref<1x1x128xf32, #tpu.memory_space<vmem>>, vector<1x1x128xf32>
      tpu.vector_store %arg12[%c0_76, %c0_77, %c0_78], %133 {strides = array<i32>} : memref<1x1x128xf32, #tpu.memory_space<vmem>>, vector<1x1x128xf32>,
    } else {
    }
    %c0_45 = arith.constant 0 : index
    %c0_46 = arith.constant 0 : index
    %c0_47 = arith.constant 0 : index
    %103 = vector.load %arg10[%c0_45, %c0_46, %c0_47] : memref<1x1x128xf32, #tpu.memory_space<vmem>>, vector<1x1x128xf32>
    %cst_48 = arith.constant dense<0xFF800000> : vector<1x128xf32>
    %104 = vector.multi_reduction <maximumf>, %97, %cst_48 [1] : vector<1x32x128xf32> to vector<1x128xf32>
    %105 = vector.shape_cast %104 : vector<1x128xf32> to vector<1x1x128xf32>
    %106 = arith.maximumf %103, %105 : vector<1x1x128xf32>
    %107 = arith.subf %103, %106 : vector<1x1x128xf32>
    %108 = math.exp %107 : vector<1x1x128xf32>
    %109 = vector.broadcast %106 : vector<1x1x128xf32> to vector<1x32x128xf32>
    %110 = arith.subf %97, %109 : vector<1x32x128xf32>
    %111 = math.exp %110 : vector<1x32x128xf32>
    %c0_49 = arith.constant 0 : index
    %c0_50 = arith.constant 0 : index
    %c0_51 = arith.constant 0 : index
    %112 = vector.load %arg11[%c0_49, %c0_50, %c0_51] : memref<1x1x128xf32, #tpu.memory_space<vmem>>, vector<1x1x128xf32>
    %113 = arith.mulf %108, %112 : vector<1x1x128xf32>
    %cst_52 = arith.constant dense<0.000000e+00> : vector<1x128xf32>
    %114 = vector.multi_reduction <add>, %111, %cst_52 [1] : vector<1x32x128xf32> to vector<1x128xf32>
    %115 = vector.shape_cast %114 : vector<1x128xf32> to vector<1x1x128xf32>
    %116 = arith.addf %113, %115 : vector<1x1x128xf32>
    %c0_53 = arith.constant 0 : index
    %c0_54 = arith.constant 0 : index
    %c0_55 = arith.constant 0 : index
    %117 = vector.load %arg11[%c0_53, %c0_54, %c0_55] : memref<1x1x128xf32, #tpu.memory_space<vmem>>, vector<1x1x128xf32>
    tpu.vector_store %arg11[%c0_53, %c0_54, %c0_55], %116 {strides = array<i32>} : memref<1x1x128xf32, #tpu.memory_space<vmem>>, vector<1x1x128xf32>,
    %c0_56 = arith.constant 0 : index
    %c0_57 = arith.constant 0 : index
    %c0_58 = arith.constant 0 : index
    %118 = vector.load %arg12[%c0_56, %c0_57, %c0_58] : memref<1x1x128xf32, #tpu.memory_space<vmem>>, vector<1x1x128xf32>
    %119 = arith.mulf %108, %118 : vector<1x1x128xf32>
    %120 = arith.mulf %111, %96 : vector<1x32x128xf32>
    %cst_59 = arith.constant dense<0.000000e+00> : vector<1x128xf32>
    %121 = vector.multi_reduction <add>, %120, %cst_59 [1] : vector<1x32x128xf32> to vector<1x128xf32>
    %122 = vector.shape_cast %121 : vector<1x128xf32> to vector<1x1x128xf32>
    %123 = arith.addf %119, %122 : vector<1x1x128xf32>
    %c0_60 = arith.constant 0 : index
    %c0_61 = arith.constant 0 : index
    %c0_62 = arith.constant 0 : index
    %124 = vector.load %arg12[%c0_60, %c0_61, %c0_62] : memref<1x1x128xf32, #tpu.memory_space<vmem>>, vector<1x1x128xf32>
    tpu.vector_store %arg12[%c0_60, %c0_61, %c0_62], %123 {strides = array<i32>} : memref<1x1x128xf32, #tpu.memory_space<vmem>>, vector<1x1x128xf32>,
    %c0_63 = arith.constant 0 : index
    %c0_64 = arith.constant 0 : index
    %c0_65 = arith.constant 0 : index
    %125 = vector.load %arg10[%c0_63, %c0_64, %c0_65] : memref<1x1x128xf32, #tpu.memory_space<vmem>>, vector<1x1x128xf32>
    tpu.vector_store %arg10[%c0_63, %c0_64, %c0_65], %106 {strides = array<i32>} : memref<1x1x128xf32, #tpu.memory_space<vmem>>, vector<1x1x128xf32>,
    %c1_i32 = arith.constant 1 : i32
    %126 = arith.cmpi eq, %arg1, %c1_i32 : i32
    %127 = arith.extui %126 : i1 to i32
    %c0_i32_66 = arith.constant 0 : i32
    %128 = arith.cmpi ne, %127, %c0_i32_66 : i32
    scf.if %128 {
      %c0_67 = arith.constant 0 : index
      %c0_68 = arith.constant 0 : index
      %c0_69 = arith.constant 0 : index
      %129 = vector.load %arg12[%c0_67, %c0_68, %c0_69] : memref<1x1x128xf32, #tpu.memory_space<vmem>>, vector<1x1x128xf32>
      %c0_70 = arith.constant 0 : index
      %c0_71 = arith.constant 0 : index
      %c0_72 = arith.constant 0 : index
      %130 = vector.load %arg11[%c0_70, %c0_71, %c0_72] : memref<1x1x128xf32, #tpu.memory_space<vmem>>, vector<1x1x128xf32>
      %131 = tpu.reciprocal %130 {approx = true} : vector<1x1x128xf32> -> vector<1x1x128xf32>
      %132 = arith.mulf %129, %131 : vector<1x1x128xf32>
      %c0_73 = arith.constant 0 : index
      %c0_74 = arith.constant 0 : index
      %c0_75 = arith.constant 0 : index
      %133 = vector.load %arg9[%c0_73, %c0_74, %c0_75] : memref<1x1x128xf32, #tpu.memory_space<vmem>>, vector<1x1x128xf32>
      tpu.vector_store %arg9[%c0_73, %c0_74, %c0_75], %132 {strides = array<i32>} : memref<1x1x128xf32, #tpu.memory_space<vmem>>, vector<1x1x128xf32>,
    } else {
    }
    return
  }
  func.func @transform_0(%arg0: i32, %arg1: i32) -> (i32, i32, i32) {
    %c0_i32 = arith.constant 0 : i32
    %c0_i32_0 = arith.constant 0 : i32
    return %arg0, %arg1, %c0_i32 : i32, i32, i32
  }
  func.func @transform_1(%arg0: i32, %arg1: i32) -> (i32, i32, i32, i32) {
    %c0_i32 = arith.constant 0 : i32
    %c0_i32_0 = arith.constant 0 : i32
    %c0_i32_1 = arith.constant 0 : i32
    return %arg0, %arg1, %c0_i32, %c0_i32_0 : i32, i32, i32, i32
  }
  func.func @transform_2(%arg0: i32, %arg1: i32) -> (i32, i32, i32) {
    %c0_i32 = arith.constant 0 : i32
    %c0_i32_0 = arith.constant 0 : i32
    %c0_i32_1 = arith.constant 0 : i32
    %c0_i32_2 = arith.constant 0 : i32
    return %c0_i32, %c0_i32_0, %c0_i32_1 : i32, i32, i32
  }
  func.func @transform_3(%arg0: i32, %arg1: i32) -> (i32, i32) {
    %c0_i32 = arith.constant 0 : i32
    %c0_i32_0 = arith.constant 0 : i32
    %c0_i32_1 = arith.constant 0 : i32
    return %c0_i32, %c0_i32_0 : i32, i32
  }
  func.func @transform_4(%arg0: i32, %arg1: i32) -> (i32, i32) {
    %c0_i32 = arith.constant 0 : i32
    %c0_i32_0 = arith.constant 0 : i32
    %c0_i32_1 = arith.constant 0 : i32
    return %c0_i32, %c0_i32_0 : i32, i32
  }
  func.func @transform_5(%arg0: i32, %arg1: i32) -> (i32, i32) {
    %c0_i32 = arith.constant 0 : i32
    %c0_i32_0 = arith.constant 0 : i32
    %c0_i32_1 = arith.constant 0 : i32
    return %c0_i32, %c0_i32_0 : i32, i32
  }
  func.func @transform_6(%arg0: i32, %arg1: i32) -> (i32, i32, i32) {
    %c0_i32 = arith.constant 0 : i32
    %c0_i32_0 = arith.constant 0 : i32
    return %arg0, %arg1, %c0_i32 : i32, i32, i32
  }
  func.func @transform_7(%arg0: i32, %arg1: i32) -> (i32, i32, i32) {
    %c0_i32 = arith.constant 0 : i32
    %c0_i32_0 = arith.constant 0 : i32
    %c0_i32_1 = arith.constant 0 : i32
    return %arg0, %c0_i32, %c0_i32_0 : i32, i32, i32
  }
}

</mosaic_0001>

<bundles_post_ra>
// kernel: tpu_custom_call.1
= control target key start
LH: loop header
LB: loop body
LE: loop exit
PB: predicated region body
PF: predicated region fallthrough
CT: control target
= control target key end

     0   :  { %s4350_s0 = inlined_call_operand.vmem [shape: f32[2,64,16], index: 0, kind: input, shape index: {}]   ;;  %s4351_s1 = inlined_call_operand.vmem [shape: f32[2,2,2,16], index: 1, kind: input, shape index: {}]   ;;  %s4352_s2 = inlined_call_operand.hbm [shape: bf16[3,16,2048], index: 2, kind: input, shape index: {}]   ;;  %s4353_s3 = inlined_call_operand.vmem [shape: f32[1,2048], index: 3, kind: input, shape index: {}]   ;;  %s4354_s4 = inlined_call_operand.vmem [shape: bf16[128,256], index: 4, kind: input, shape index: {}]   ;;  %s4355_s5 = inlined_call_operand.vmem [shape: f32[1,256], index: 5, kind: input, shape index: {}]   ;;  %s4356_s6 = inlined_call_operand.hbm [shape: bf16[2,64,128], index: 6, kind: output, shape index: {0}]   ;;  %s4357_s7 = inlined_call_operand.hbm [shape: f32[2,1,128], index: 7, kind: output, shape index: {1}]  }
   0x1   :  { %4374 = sst [smem:[#allocation29_spill]] %s4350_s0 }
   0x2   :  { %4375 = sst [smem:[#allocation30_spill]] %s4351_s1 }
   0x3   :  { %4376 = sst [smem:[#allocation31_spill]] %s4352_s2 }
   0x4   :  { %4377 = sst [smem:[#allocation32_spill]] %s4353_s3 }
   0x5   :  { %4378 = sst [smem:[#allocation33_spill]] %s4354_s4 }
   0x6   :  { %4379 = sst [smem:[#allocation34_spill]] %s4355_s5 }
   0x7   :  { %4380 = sst [smem:[#allocation35_spill]] %s4356_s6 }
   0x8   :  { %13 = vsyncpa [#allocation6], 0 }
   0x9   :  { %14 = vsyncpa [#allocation7], 0 }
   0xa   :  { %16 = vsyncpa [#allocation7 + $0x1], 0 }
   0xb   :  { %17 = vsyncpa [#allocation10], 0 }
   0xc   :  { %19 = vsyncpa [#allocation10 + $0x1], 0  ;;  %s3340_s24 = smov 0   ;;  %s3342_s25 = smov 0  }
   0xd   :  { %s3344_s26 = smov 0   ;;  %s3346_s27 = smov 0  }
   0xe   :  { %s3348_s28 = smov 0   ;;  %s3350_s29 = smov 0  }
   0xf   :  { %s3352_s30 = smov 0   ;;  %s3354_s8 = smov 0  }
  0x10   :  { %s3356_s9 = smov 0   ;;  %s3358_s10 = smov 0  }
  0x11   :  { %s3360_s11 = smov 0  }
  0x12 LB: > { %4381 = sst [smem:[#allocation14_spill]] %s3260_s27  ;;  %s4358_s12 = sadd.s32 4294967295, %s3288_s11   ;;  %s3288_s11 = sphi %s3360_s11, %s25_s11   ;;  %s3284_s10 = sphi %s3358_s10, %s4439_s10   ;;  %s3280_s9 = sphi %s3356_s9, %s4446_s9   ;;  %s3276_s8 = sphi %s3354_s8, %s4437_s8   ;;  %s3272_s30 = sphi %s3352_s30, %s4436_s30   ;;  %s3268_s29 = sphi %s3350_s29, %s4445_s29   ;;  %s3264_s28 = sphi %s3348_s28, %s4444_s28   ;;  %s3260_s27 = sphi %s3346_s27, %s4443_s27   ;;  %s3256_s26 = sphi %s3344_s26, %s4442_s26   ;;  %s3252_s25 = sphi %s3342_s25, %s4441_s25   ;;  %s3248_s24 = sphi %s3340_s24, %s4440_s24  }
  0x13   : > { %4382 = sst [smem:[#allocation15_spill]] %s3280_s9  ;;  %s2790_s13 = sadd.s32 4294967294, %s3288_s11  }
  0x14   : > { %4383 = sst [smem:[#allocation16_spill]] %s3284_s10  ;;  %s34_s14 = sadd.s32 1, %s3280_s9 }
  0x15   : > { %s37_s15 = sadd.s32 1, %s3284_s10  ;;  %p35_p0 = scmp.ge.s32.totalorder %s34_s14, 2 }
  0x16   : > { %s186_s16 = sadd.s32 1, %s3268_s29  ;;  %p196_p1 = scmp.ne.s32.totalorder %s3268_s29, %s3264_s28 }
  0x17   : > { %p3404_p2 = scmp.eq.s32.totalorder %s4358_s12, 3  ;;  %s4448_s14 = smov (%p35_p0, %s34_s14), 0 }
  0x18   : > { %4385 = sst [smem:[#allocation17_spill]] %s4448_s14  ;;  %s4450_s15 = smov (!%p35_p0, %s37_s15), %s3284_s10 }
  0x19   : > { %s182_s18 = ssub.s32 %s3280_s9, %s4448_s14  ;;  %p3415_p3 = por %p3404_p2, %p196_p1 }
  0x1a   : > { %p39_p4 = scmp.ge.s32.totalorder %s4450_s15, 2  ;;  %p202_p5 = scmp.ne.s32.totalorder %s3264_s28, %s3260_s27 }
  0x1b   : > { %p3421_p6 = scmp.eq.s32.totalorder %s2790_s13, 3  ;;  %s212_s21 = sadd.s32 1, %s3256_s26 }
  0x1c   : > { %s4452_s15 = smov (%p39_p4, %s4450_s15), 0  ;;  %p222_p8 = scmp.ne.s32.totalorder %s3256_s26, %s3252_s25 }
  0x1d   : > { %4388 = sst [smem:[#allocation18_spill]] %s4452_s15  ;;  %p3430_p7 = por %p3421_p6, %p202_p5 }
  0x1e   : > { %s181_s23 = ssub.s32 %s3284_s10, %s4452_s15  ;;  %p228_p9 = scmp.ne.s32.totalorder %s3252_s25, %s3248_s24 }
  0x1f   : > { %s4389_s22 = scalar_select %p3430_p7, 1, 0 }
  0x20   : > { %s183_s12 = sor.u32 %s182_s18, %s181_s23  ;;  %p210_p10 = scmp.eq.s32.totalorder %s181_s23, 0 }
  0x21   : > { %p184_p11 = scmp.eq.s32.totalorder %s183_s12, 0  ;;  %p3442_p12 = por %p222_p8, %p3404_p2 }
  0x22   : > { %s3447_s14 = scalar_select %p210_p10, %s3256_s26, %s212_s21  }
  0x23   : > { %s4390_s13 = scalar_select %p3442_p12, 1, 0 }
  0x24   : > { %s3450_s9 = scalar_select %p184_p11, %s3268_s29, %s186_s16  }
  0x25   : > { %p3454_p13 = por %p228_p9, %p3421_p6  ;;  %p2791_p0 = scmp.ge.s32.totalorder %s3288_s11, 1 }
  0x26   : > { %p236_p1 = scmp.lt.s32.totalorder %s3288_s11, 5  ;;  %s4392_s15 = sadd.s32 4294967295, %s3288_s11  }
  0x27   : > { %s4391_s27 = scalar_select %p3454_p13, 1, 0 }
  0x28   : > { %p3462_p4 = scmp.eq.s32.totalorder %s4392_s15, 0  ;;  %p3466_p2 = pnand %p2791_p0, %p236_p1 }
  0x29   : > { %s3290_s16 = smov [#allocation5]  }
  0x2a   : > { %s248_s17 = sshll.u32 %s3290_s16, 4  ;;  %p2950_p5 = pneg %p3466_p2  ;;  %s249_s17 = int_to_ptr.vmem [resolvable:$true] %s248_s17 }
  0x2b   : > { %s3123_s20 = scalar_lea.vmem %s249_s17, 6144  ;;  %p3131_p13 = scmp.lt.s32.totalorder %s249_s17, %s249_s17 }
  0x2c   : > { %p2951_p6 = pnand %p3462_p4, %p2950_p5  ;;  %p3124_p9 = scmp.ne.s32.totalorder %s249_s17, %s3123_s20 }
  0x2d   : > { %p3132_p7 = scmp.lt.s32.totalorder %s3123_s20, %s3123_s20 }
  0x2e   : > { %p3114_p8 = pneg %p2951_p6 }
  0x2f   : > { %p3133_p12 = por %p3132_p7, %p3131_p13 }
  0x30   : > { %p3126_p10 = pnand %p3124_p9, %p3114_p8 }
  0x32   : > { %p3127_p11 = pneg %p3126_p10 }
  0x34   : > { %p3134_p0 = pnand %p3133_p12, %p3127_p11 }
  0x36   : > { %3137 = shalt.err (!%p3134_p0)
}
  0x37   : > { %s3291_s15 = smov 1024   ;;  %s3292_s21 = smov 64  }
  0x38   : > { %s4395_s2 = sld [smem:[#allocation31_spill]] }
  0x3a   : > { %297 = sbr.rel (%p3466_p2) target bundleno = 863 (0x35f), region = 44 }
  0x3e   : > { %2953 = dma.hbm_to_vmem [thread:$0]  (!%p2951_p6), %s4395_s2, 6144, %s249_s17, [#allocation6], %s3291_s15, %s3291_s15, %s3292_s21  }
  0x3f   : > { %3235 = dma.done.wait (%p3462_p4), [#allocation6], 6144  }
  0x40   : > { %3237 = vsyncadd (%p3462_p4), [#allocation6], 4294961152  ;;  %s3485_s20 = sshll.u32 %s3272_s30, 2  ;;  %v4365_v0 = vmov 0   ;;  %p346_p7 = scmp.lt.s32.totalorder %s3276_s8, 1  ;;  %v418_v1 = vld [vmem:[#allocation5 + $0x80] sm:$0xff] }
  0x41   : > { %505 = vmatprep.mubr.bf16.mxu1 %v4365_v0  ;;  %611 = vmatprep.mubr.bf16.mxu0 %v4365_v0  ;;  %p348_p12 = scmp.lt.s32.totalorder %s3485_s20, 7  ;;  %p357_p13 = scmp.lt.s32.totalorder %s3272_s30, 1  ;;  %v422_v2 = vld [vmem:[#allocation5 + $0xc0] sm:$0xff]  ;;  %v420_v3 = vld [vmem:[#allocation5 + $0x90] sm:$0xff]  ;;  %v419_v7 = vld [vmem:[#allocation5 + $0x88] sm:$0xff]  ;;  %vm466_vm0 = vcmask 130048  }
  0x42   : > { %s3492_s10 = scalar_select %p346_p7, %s3276_s8, 1  ;;  %v2803_v4 = vcombine.high %v418_v1, %v422_v2  ;;  %v424_v5 = vld [vmem:[#allocation5 + $0xd0] sm:$0xff]  ;;  %v2802_v6 = vcombine.low %v418_v1, %v422_v2  ;;  %v423_v8 = vld [vmem:[#allocation5 + $0xc8] sm:$0xff]  ;;  %v409_v14 = vld [vmem:[#allocation5] sm:$0xff]  ;;  %vm374_vm1 = vcmask 1040384   ;;  %vm387_vm2 = vcmask 1046528  }
  0x43   : > { %s349_s18 = scalar_select %p348_p12, %s3485_s20, 7  ;;  %v2807_v9 = vcombine.high %v420_v3, %v424_v5  ;;  %v2806_v10 = vcombine.low %v420_v3, %v424_v5  ;;  %v2805_v13 = vcombine.high %v419_v7, %v423_v8  ;;  %v2804_v16 = vcombine.low %v419_v7, %v423_v8  ;;  %v413_v17 = vld [vmem:[#allocation5 + $0x40] sm:$0xff]  ;;  %v421_v18 = vld [vmem:[#allocation5 + $0x98] sm:$0xff]  ;;  %v411_v21 = vld [vmem:[#allocation5 + $0x10] sm:$0xff] }
  0x44   : > { %s2798_s12 = sshll.u32 %s3492_s10, 3  ;;  %s4396_s0 = sld [smem:[#allocation29_spill]]  ;;  %487 = vmatprep.subr.bf16.mxu1 %v2803_v4  ;;  %v425_v19 = vld [vmem:[#allocation5 + $0xd8] sm:$0xff]  ;;  %v2819_v20 = vcombine.high %v409_v14, %v413_v17  ;;  %v415_v22 = vld [vmem:[#allocation5 + $0x50] sm:$0xff]  ;;  %v2818_v23 = vcombine.low %v409_v14, %v413_v17  ;;  %v410_v34 = vld [vmem:[#allocation5 + $0x8] sm:$0xff] }
  0x45   : > { %s351_s17 = sadd.s32 %s2798_s12, %s349_s18  ;;  %s2800_s2 = sshll.u32 %s3492_s10, 1  ;;  %593 = vmatprep.subr.bf16.mxu0 %v2807_v9  ;;  %488 = vmatpush1.bf16.msra.mxu1 %v2802_v6  ;;  %v2809_v24 = vcombine.high %v421_v18, %v425_v19  ;;  %v2823_v25 = vcombine.high %v411_v21, %v415_v22  ;;  %v414_v35 = vld [vmem:[#allocation5 + $0x48] sm:$0xff]  ;;  %v944_v36 = vld [vmem:[#allocation5 + $0x100] sm:$0xff]  ;;  %v2808_v37 = vcombine.low %v421_v18, %v425_v19  ;;  %v412_v48 = vld [vmem:[#allocation5 + $0x18] sm:$0xff] }
  0x46   : > { %s2799_s15 = sshll.u32 %s351_s17, 3  ;;  %594 = vmatpush1.bf16.msra.mxu0 %v2806_v10  ;;  %540 = vmatprep.subr.bf16.mxu1 %v2805_v13  ;;  %s4397_s1 = sld [smem:[#allocation30_spill]]  ;;  %v948_v39 = vld [vmem:[#allocation5 + $0x140] sm:$0xff]  ;;  %v2822_v42 = vcombine.low %v411_v21, %v415_v22  ;;  %v2821_v43 = vcombine.high %v410_v34, %v414_v35  ;;  %v416_v49 = vld [vmem:[#allocation5 + $0x58] sm:$0xff]  ;;  %v2820_v50 = vcombine.low %v410_v34, %v414_v35  ;;  %v946_v51 = vld [vmem:[#allocation5 + $0x110] sm:$0xff] }
  0x47   : > { %s358_s18 = scalar_select %p357_p13, %s3272_s30, 1  ;;  %745 = vmatprep.subr.bf16.mxu0 %v2819_v20  ;;  %v2835_v44 = vcombine.high %v944_v36, %v948_v39  ;;  %v950_v52 = vld [vmem:[#allocation5 + $0x150] sm:$0xff]  ;;  %v2834_v53 = vcombine.low %v944_v36, %v948_v39  ;;  %v2825_v54 = vcombine.high %v412_v48, %v416_v49  ;;  %v945_v61 = vld [vmem:[#allocation5 + $0x108] sm:$0xff]  ;;  %v2824_v63 = vcombine.low %v412_v48, %v416_v49  ;;  %v1388_v2 = vld [vmem:[#allocation5 + $0xa0] sm:$0xff] }
  0x48   : > { %v2839_v55 = vcombine.high %v946_v51, %v950_v52  ;;  %v949_v62 = vld [vmem:[#allocation5 + $0x148] sm:$0xff]  ;;  %v1392_v3 = vld [vmem:[#allocation5 + $0xe0] sm:$0xff]  ;;  %v2838_v6 = vcombine.low %v946_v51, %v950_v52  ;;  %v951_v13 = vld [vmem:[#allocation5 + $0x158] sm:$0xff]  ;;  %s4399_s3 = sld [smem:[#allocation32_spill]]  ;;  %s336_s23 = sand.u32 1, %s3264_s28  }
  0x49   : > { %s360_s10 = sadd.s32 %s2800_s2, %s358_s18  ;;  %v2837_v7 = vcombine.high %v945_v61, %v949_v62  ;;  %v2851_v8 = vcombine.high %v1388_v2, %v1392_v3  ;;  %v2836_v14 = vcombine.low %v945_v61, %v949_v62  ;;  %v1394_v17 = vld [vmem:[#allocation5 + $0xf0] sm:$0xff]  ;;  %v2850_v18 = vcombine.low %v1388_v2, %v1392_v3  ;;  %v1389_v21 = vld [vmem:[#allocation5 + $0xa8] sm:$0xff]  ;;  %v1383_v48 = vld [vmem:[#allocation5 + $0x38] sm:$0xff]  ;;  %s4401_s4 = sld [smem:[#allocation33_spill]] }
  0x4a   : > { %s3500_s16 = scalar_lea.vmem %s4396_s0, %s2799_s15  ;;  %s2801_s12 = sshll.u32 %s360_s10, 1  ;;  %v1393_v22 = vld [vmem:[#allocation5 + $0xe8] sm:$0xff]  ;;  %v1386_v34 = vld [vmem:[#allocation5 + $0x70] sm:$0xff]  ;;  %v1387_v49 = vld [vmem:[#allocation5 + $0x78] sm:$0xff] }
  0x4b   : > { %v3504_v11 = vld [vmem:[%s3500_s16] sm:$0xff]  ;;  %v3507_v12 = vld [vmem:[%s3500_s16 + $0x8] sm:$0xff]  ;;  %v3521_v26 = vld [vmem:[%s3500_s16 + $0x10] sm:$0xff]  ;;  %s4425_s5 = sld [smem:[#allocation34_spill]]  ;;  %s2796_s18 = sshll.u32 %s336_s23, 4 }
  0x4c   : > { %v3514_v15 = vpack.c.bf16 %v3507_v12, %v3504_v11  ;;  %v3524_v27 = vld [vmem:[%s3500_s16 + $0x18] sm:$0xff]  ;;  %s362_s15 = scalar_lea.vmem %s4397_s1, %s2801_s12  ;;  %v375_v29 = vrot.slane %v3504_v11, 7  ;;  %v376_v30 = vrot.slane %v3507_v12, 7  ;;  %v378_v40 = vrot.slane %v3521_v26, 7  ;;  %v1381_v39 = vld [vmem:[#allocation5 + $0x28] sm:$0xff]  ;;  %s4240_s10 = scalar_lea.vmem [#allocation8], %s2796_s18 }
  0x4d   : > { %v3530_v28 = vpack.c.bf16 %v3524_v27, %v3521_v26  ;;  %v3537_v31 = vld [vmem:[%s362_s15] sm:$0x3]  ;;  %v380_v41 = vrot.slane %v3524_v27, 7  ;;  %v388_v56 = vrot.slane %v3504_v11, 1  ;;  %v389_v57 = vrot.slane %v3507_v12, 1  ;;  %v1902_v51 = vld [vmem:[#allocation5 + $0x130] sm:$0xff] }
  0x4e   : > { %2810 = vmatmul.mubr.msk.bf16.vlgmr.msra.gmra.mxu1 %vm466_vm0, %v3514_v15  ;;  %2814 = vmatmul.mubr.msk.bf16.vlgmr.msra.gmra.mxu0 %vm466_vm0, %v3514_v15  ;;  %v377_v32 = vsel %vm374_vm1, %v375_v29, %v376_v30  ;;  %v386_v33 = vsel %vm374_vm1, %v3537_v31, %v375_v29  ;;  %v379_v45 = vsel %vm374_vm1, %v376_v30, %v378_v40  ;;  %v391_v58 = vrot.slane %v3521_v26, 1  ;;  %v947_v12 = vld [vmem:[#allocation5 + $0x118] sm:$0xff]  ;;  %v1906_v52 = vld [vmem:[#allocation5 + $0x170] sm:$0xff]  ;;  %s4428_s12 = sand.u32 1, %s3252_s25   ;;  %p2918_p1 = scmp.ne.s32.totalorder %s3272_s30, 0 }
  0x4f   : > { %541 = vmatpush1.bf16.msra.mxu1 %v2804_v16  ;;  %515 = vmatprep.mubr.bf16.mxu1 %v4365_v0  ;;  %v3548_v38 = vpack.c.bf16 %v377_v32, %v386_v33  ;;  %v381_v46 = vsel %vm374_vm1, %v378_v40, %v380_v41  ;;  %v390_v59 = vsel %vm387_vm2, %v388_v56, %v389_v57  ;;  %v393_v4 = vrot.slane %v3524_v27, 1  ;;  %v1390_v16 = vld [vmem:[#allocation5 + $0xb0] sm:$0xff]  ;;  %v1391_v30 = vld [vmem:[#allocation5 + $0xb8] sm:$0xff]  ;;  %v1385_v40 = vld [vmem:[#allocation5 + $0x68] sm:$0xff]  ;;  %s4246_s2 = scalar_lea.vmem [#allocation9], %s4428_s12 }
  0x50   : > { %621 = vmatprep.mubr.bf16.mxu0 %v4365_v0  ;;  %746 = vmatpush1.bf16.msra.mxu0 %v2818_v23  ;;  %v3560_v47 = vpack.c.bf16 %v381_v46, %v379_v45  ;;  %v392_v60 = vsel %vm387_vm2, %v389_v57, %v391_v58  ;;  %v400_v5 = vrot.slane %v3537_v31, 2  ;;  %v2841_v19 = vcombine.high %v947_v12, %v951_v13  ;;  %v1395_v31 = vld [vmem:[#allocation5 + $0xf8] sm:$0xff]  ;;  %v1382_v33 = vld [vmem:[#allocation5 + $0x30] sm:$0xff]  ;;  %v1905_v56 = vld [vmem:[#allocation5 + $0x168] sm:$0xff] }
  0x51   : > { %646 = vmatprep.subr.bf16.mxu1 %v2809_v24  ;;  %851 = vmatprep.subr.bf16.mxu0 %v2823_v25  ;;  %v3585_v1 = vpack.c.bf16 %v392_v60, %v390_v59  ;;  %v394_v9 = vsel %vm387_vm2, %v391_v58, %v393_v4  ;;  %v2855_v20 = vcombine.high %v1390_v16, %v1394_v17  ;;  %v1380_v24 = vld [vmem:[#allocation5 + $0x20] sm:$0xff]  ;;  %v1907_v60 = vld [vmem:[#allocation5 + $0x178] sm:$0xff] }
  0x52   : > { %v402_v10 = vsel %vm387_vm2, %v393_v4, %v400_v5  ;;  %v2840_v23 = vcombine.low %v947_v12, %v951_v13  ;;  %v1384_v25 = vld [vmem:[#allocation5 + $0x60] sm:$0xff]  ;;  %v2854_v26 = vcombine.low %v1390_v16, %v1394_v17  ;;  %v2853_v27 = vcombine.high %v1389_v21, %v1393_v22 }
  0x53   : > { %v3597_v11 = vpack.c.bf16 %v402_v10, %v394_v9  ;;  %v2867_v29 = vcombine.high %v1380_v24, %v1384_v25  ;;  %v2852_v32 = vcombine.low %v1389_v21, %v1393_v22  ;;  %v2866_v35 = vcombine.low %v1380_v24, %v1384_v25 }
  0x54   : > { %v2857_v36 = vcombine.high %v1391_v30, %v1395_v31  ;;  %v2856_v41 = vcombine.low %v1391_v30, %v1395_v31  ;;  %v2869_v45 = vcombine.high %v1381_v39, %v1385_v40  ;;  %v2872_v57 = vcombine.low %v1383_v48, %v1387_v49 }
  0x55   : > { %v2886_v58 = vcombine.low %v1902_v51, %v1906_v52 }
  0x56   : > { %2811 = vmatmul.mubr.msk.bf16.gmra.mxu1 %vm466_vm0, %v3530_v28  ;;  %2815 = vmatmul.mubr.msk.bf16.gmra.mxu0 %vm466_vm0, %v3530_v28 }
  0x57   : > { %558 = vmatprep.mubr.bf16.mxu1 %v4365_v0  ;;  %763 = vmatprep.mubr.bf16.mxu0 %v4365_v0 }
  0x5e   : > { %2812 = vmatmul.mubr.msk.bf16.vlgmr.msra.gmra.mxu1 %vm466_vm0, %v3514_v15  ;;  %2826 = vmatmul.mubr.msk.bf16.vlgmr.msra.gmra.mxu0 %vm466_vm0, %v3548_v38 }
  0x5f   : > { %647 = vmatpush1.bf16.msra.mxu1 %v2808_v37  ;;  %568 = vmatprep.mubr.bf16.mxu1 %v4365_v0  ;;  %v2871_v37 = vcombine.high %v1382_v33, %v1386_v34 }
  0x60   : > { %773 = vmatprep.mubr.bf16.mxu0 %v4365_v0  ;;  %852 = vmatpush1.bf16.msra.mxu0 %v2822_v42  ;;  %v1900_v42 = vld [vmem:[#allocation5 + $0x120] sm:$0xff] }
  0x61   : > { %798 = vmatprep.subr.bf16.mxu1 %v2821_v43  ;;  %1012 = vmatprep.subr.bf16.mxu0 %v2835_v44  ;;  %v1904_v43 = vld [vmem:[#allocation5 + $0x160] sm:$0xff]  ;;  %v2870_v44 = vcombine.low %v1382_v33, %v1386_v34 }
  0x62   : > { %v2883_v46 = vcombine.high %v1900_v42, %v1904_v43 }
  0x66   : > { %2813 = vmatmul.mubr.msk.bf16.gmra.mxu1 %vm466_vm0, %v3530_v28  ;;  %2827 = vmatmul.mubr.msk.bf16.gmra.mxu0 %vm466_vm0, %v3560_v47 }
  0x67   : > { %664 = vmatprep.mubr.bf16.mxu1 %v4365_v0  ;;  %869 = vmatprep.mubr.bf16.mxu0 %v4365_v0 }
  0x6e   : > { %2816 = vmatmul.mubr.msk.bf16.vlgmr.msra.gmra.mxu1 %vm466_vm0, %v3514_v15  ;;  %2830 = vmatmul.mubr.msk.bf16.vlgmr.msra.gmra.mxu0 %vm466_vm0, %v3548_v38 }
  0x6f   : > { %799 = vmatpush1.bf16.msra.mxu1 %v2820_v50  ;;  %674 = vmatprep.mubr.bf16.mxu1 %v4365_v0  ;;  %v2868_v50 = vcombine.low %v1381_v39, %v1385_v40 }
  0x70   : > { %879 = vmatprep.mubr.bf16.mxu0 %v4365_v0  ;;  %1013 = vmatpush1.bf16.msra.mxu0 %v2834_v53  ;;  %v2882_v53 = vcombine.low %v1900_v42, %v1904_v43 }
  0x71   : > { %904 = vmatprep.subr.bf16.mxu1 %v2825_v54  ;;  %1118 = vmatprep.subr.bf16.mxu0 %v2839_v55  ;;  %v2873_v54 = vcombine.high %v1383_v48, %v1387_v49  ;;  %v2887_v55 = vcombine.high %v1902_v51, %v1906_v52 }
  0x76   : > { %2817 = vmatmul.mubr.msk.bf16.gmra.mxu1 %vm466_vm0, %v3530_v28  ;;  %2831 = vmatmul.mubr.msk.bf16.gmra.mxu0 %vm466_vm0, %v3560_v47 }
  0x77   : > { %816 = vmatprep.mubr.bf16.mxu1 %v4365_v0  ;;  %1030 = vmatprep.mubr.bf16.mxu0 %v4365_v0 }
  0x7e   : > { %2828 = vmatmul.mubr.msk.bf16.vlgmr.msra.gmra.mxu1 %vm466_vm0, %v3548_v38  ;;  %2842 = vmatmul.mubr.msk.bf16.vlgmr.msra.gmra.mxu0 %vm466_vm0, %v3585_v1 }
  0x7f   : > { %905 = vmatpush1.bf16.msra.mxu1 %v2824_v63  ;;  %826 = vmatprep.mubr.bf16.mxu1 %v4365_v0 }
  0x80   : > { %1040 = vmatprep.mubr.bf16.mxu0 %v4365_v0  ;;  %1119 = vmatpush1.bf16.msra.mxu0 %v2838_v6 }
  0x81   : > { %1065 = vmatprep.subr.bf16.mxu1 %v2837_v7  ;;  %1450 = vmatprep.subr.bf16.mxu0 %v2851_v8 }
  0x86   : > { %2829 = vmatmul.mubr.msk.bf16.gmra.mxu1 %vm466_vm0, %v3560_v47  ;;  %2843 = vmatmul.mubr.msk.bf16.gmra.mxu0 %vm466_vm0, %v3597_v11 }
  0x87   : > { %922 = vmatprep.mubr.bf16.mxu1 %v4365_v0  ;;  %1136 = vmatprep.mubr.bf16.mxu0 %v4365_v0 }
  0x8e   : > { %2832 = vmatmul.mubr.msk.bf16.vlgmr.msra.gmra.mxu1 %vm466_vm0, %v3548_v38  ;;  %2846 = vmatmul.mubr.msk.bf16.vlgmr.msra.gmra.mxu0 %vm466_vm0, %v3585_v1 }
  0x8f   : > { %1066 = vmatpush1.bf16.msra.mxu1 %v2836_v14  ;;  %932 = vmatprep.mubr.bf16.mxu1 %v4365_v0 }
  0x90   : > { %1146 = vmatprep.mubr.bf16.mxu0 %v4365_v0  ;;  %1451 = vmatpush1.bf16.msra.mxu0 %v2850_v18 }
  0x91   : > { %1171 = vmatprep.subr.bf16.mxu1 %v2841_v19  ;;  %1556 = vmatprep.subr.bf16.mxu0 %v2855_v20 }
  0x96   : > { %2833 = vmatmul.mubr.msk.bf16.gmra.mxu1 %vm466_vm0, %v3560_v47  ;;  %2847 = vmatmul.mubr.msk.bf16.gmra.mxu0 %vm466_vm0, %v3597_v11 }
  0x97   : > { %1083 = vmatprep.mubr.bf16.mxu1 %v4365_v0  ;;  %1468 = vmatprep.mubr.bf16.mxu0 %v4365_v0 }
  0x9e   : > { %2844 = vmatmul.mubr.msk.bf16.vlgmr.msra.gmra.mxu1 %vm466_vm0, %v3585_v1  ;;  %2858 = vmatmul.mubr.msk.bf16.vlgmr.msra.gmra.mxu0 %vm466_vm0, %v3514_v15 }
  0x9f   : > { %1172 = vmatpush1.bf16.msra.mxu1 %v2840_v23  ;;  %1093 = vmatprep.mubr.bf16.mxu1 %v4365_v0 }
  0xa0   : > { %1478 = vmatprep.mubr.bf16.mxu0 %v4365_v0  ;;  %1557 = vmatpush1.bf16.msra.mxu0 %v2854_v26 }
  0xa1   : > { %1503 = vmatprep.subr.bf16.mxu1 %v2853_v27  ;;  %1702 = vmatprep.subr.bf16.mxu0 %v2867_v29 }
  0xa6   : > { %2845 = vmatmul.mubr.msk.bf16.gmra.mxu1 %vm466_vm0, %v3597_v11  ;;  %2859 = vmatmul.mubr.msk.bf16.gmra.mxu0 %vm466_vm0, %v3530_v28 }
  0xa7   : > { %1189 = vmatprep.mubr.bf16.mxu1 %v4365_v0  ;;  %1574 = vmatprep.mubr.bf16.mxu0 %v4365_v0 }
  0xae   : > { %2848 = vmatmul.mubr.msk.bf16.vlgmr.msra.gmra.mxu1 %vm466_vm0, %v3585_v1  ;;  %2862 = vmatmul.mubr.msk.bf16.vlgmr.msra.gmra.mxu0 %vm466_vm0, %v3514_v15 }
  0xaf   : > { %1504 = vmatpush1.bf16.msra.mxu1 %v2852_v32  ;;  %1199 = vmatprep.mubr.bf16.mxu1 %v4365_v0 }
  0xb0   : > { %1584 = vmatprep.mubr.bf16.mxu0 %v4365_v0  ;;  %1703 = vmatpush1.bf16.msra.mxu0 %v2866_v35 }
  0xb1   : > { %1609 = vmatprep.subr.bf16.mxu1 %v2857_v36  ;;  %1808 = vmatprep.subr.bf16.mxu0 %v2871_v37 }
  0xb6   : > { %2849 = vmatmul.mubr.msk.bf16.gmra.mxu1 %vm466_vm0, %v3597_v11  ;;  %2863 = vmatmul.mubr.msk.bf16.gmra.mxu0 %vm466_vm0, %v3530_v28 }
  0xb7   : > { %1521 = vmatprep.mubr.bf16.mxu1 %v4365_v0  ;;  %1720 = vmatprep.mubr.bf16.mxu0 %v4365_v0 }
  0xbe   : > { %2860 = vmatmul.mubr.msk.bf16.vlgmr.msra.gmra.mxu1 %vm466_vm0, %v3514_v15  ;;  %2874 = vmatmul.mubr.msk.bf16.vlgmr.msra.gmra.mxu0 %vm466_vm0, %v3548_v38 }
  0xbf   : > { %1610 = vmatpush1.bf16.msra.mxu1 %v2856_v41  ;;  %1531 = vmatprep.mubr.bf16.mxu1 %v4365_v0 }
  0xc0   : > { %1730 = vmatprep.mubr.bf16.mxu0 %v4365_v0  ;;  %1809 = vmatpush1.bf16.msra.mxu0 %v2870_v44 }
  0xc1   : > { %1755 = vmatprep.subr.bf16.mxu1 %v2869_v45  ;;  %1962 = vmatprep.subr.bf16.mxu0 %v2883_v46 }
  0xc6   : > { %2861 = vmatmul.mubr.msk.bf16.gmra.mxu1 %vm466_vm0, %v3530_v28  ;;  %2875 = vmatmul.mubr.msk.bf16.gmra.mxu0 %vm466_vm0, %v3560_v47 }
  0xc7   : > { %1627 = vmatprep.mubr.bf16.mxu1 %v4365_v0  ;;  %1826 = vmatprep.mubr.bf16.mxu0 %v4365_v0 }
  0xce   : > { %2864 = vmatmul.mubr.msk.bf16.vlgmr.msra.gmra.mxu1 %vm466_vm0, %v3514_v15  ;;  %2878 = vmatmul.mubr.msk.bf16.vlgmr.msra.gmra.mxu0 %vm466_vm0, %v3548_v38  ;;  %v1901_v15 = vld [vmem:[#allocation5 + $0x128] sm:$0xff] }
  0xcf   : > { %1756 = vmatpush1.bf16.msra.mxu1 %v2868_v50  ;;  %1637 = vmatprep.mubr.bf16.mxu1 %v4365_v0  ;;  %v2885_v59 = vcombine.high %v1901_v15, %v1905_v56  ;;  %v2884_v61 = vcombine.low %v1901_v15, %v1905_v56  ;;  %v1244_v50 = vlaneseq }
  0xd0   : > { %1836 = vmatprep.mubr.bf16.mxu0 %v4365_v0  ;;  %1963 = vmatpush1.bf16.msra.mxu0 %v2882_v53 }
  0xd1   : > { %1861 = vmatprep.subr.bf16.mxu1 %v2873_v54  ;;  %2068 = vmatprep.subr.bf16.mxu0 %v2887_v55  ;;  %v3740_v56 = vshrl.u32 %v1244_v50, 7 }
  0xd6   : > { %2865 = vmatmul.mubr.msk.bf16.gmra.mxu1 %vm466_vm0, %v3530_v28  ;;  %2879 = vmatmul.mubr.msk.bf16.gmra.mxu0 %vm466_vm0, %v3560_v47  ;;  %v1903_v28 = vld [vmem:[#allocation5 + $0x138] sm:$0xff] }
  0xd7   : > { %1773 = vmatprep.mubr.bf16.mxu1 %v4365_v0  ;;  %1980 = vmatprep.mubr.bf16.mxu0 %v4365_v0  ;;  %v2889_v62 = vcombine.high %v1903_v28, %v1907_v60 }
  0xde   : > { %2876 = vmatmul.mubr.msk.bf16.vlgmr.msra.gmra.mxu1 %vm466_vm0, %v3548_v38  ;;  %2890 = vmatmul.mubr.msk.bf16.vlgmr.msra.gmra.mxu0 %vm466_vm0, %v3585_v1 }
  0xdf   : > { %1862 = vmatpush1.bf16.msra.mxu1 %v2872_v57  ;;  %1783 = vmatprep.mubr.bf16.mxu1 %v4365_v0 }
  0xe0   : > { %1990 = vmatprep.mubr.bf16.mxu0 %v4365_v0  ;;  %2069 = vmatpush1.bf16.msra.mxu0 %v2886_v58 }
  0xe1   : > { %2015 = vmatprep.subr.bf16.mxu1 %v2885_v59 }
  0xe6   : > { %2877 = vmatmul.mubr.msk.bf16.gmra.mxu1 %vm466_vm0, %v3560_v47  ;;  %2891 = vmatmul.mubr.msk.bf16.gmra.mxu0 %vm466_vm0, %v3597_v11 }
  0xe7   : > { %1879 = vmatprep.mubr.bf16.mxu1 %v4365_v0  ;;  %2086 = vmatprep.mubr.bf16.mxu0 %v4365_v0 }
  0xee   : > { %2880 = vmatmul.mubr.msk.bf16.vlgmr.msra.gmra.mxu1 %vm466_vm0, %v3548_v38  ;;  %2894 = vmatmul.mubr.msk.bf16.vlgmr.msra.gmra.mxu0 %vm466_vm0, %v3585_v1  ;;  %v2888_v38 = vcombine.low %v1903_v28, %v1907_v60 }
  0xef   : > { %2016 = vmatpush1.bf16.msra.mxu1 %v2884_v61  ;;  %1889 = vmatprep.mubr.bf16.mxu1 %v4365_v0 }
  0xf0   : > { %2096 = vmatprep.mubr.bf16.mxu0 %v4365_v0  ;;  %2121 = vmatprep.subr.bf16.mxu1 %v2889_v62  ;;  %v3751_v62 = vsub.s32 0, %v3740_v56 }
  0xf2   : > { %4398 = vst [vmem:[#allocation19_spill] sm:$0xff] %v3751_v62 }
  0xf6   : > { %2881 = vmatmul.mubr.msk.bf16.gmra.mxu1 %vm466_vm0, %v3560_v47  ;;  %2895 = vmatmul.mubr.msk.bf16.gmra.mxu0 %vm466_vm0, %v3597_v11 }
  0xf7   : > { %2033 = vmatprep.mubr.bf16.mxu1 %v4365_v0  ;;  %2476 = vmatprep.mubr.bf16.mxu0 %v4365_v0 }
  0xfe   : > { %2892 = vmatmul.mubr.msk.bf16.vlgmr.msra.gmra.mxu1 %vm466_vm0, %v3585_v1 }
  0xff   : > { %2122 = vmatpush1.bf16.msra.mxu1 %v2888_v38  ;;  %2043 = vmatprep.mubr.bf16.mxu1 %v4365_v0 }
 0x106   : > { %2893 = vmatmul.mubr.msk.bf16.gmra.mxu1 %vm466_vm0, %v3597_v11 }
 0x107   : > { %2139 = vmatprep.mubr.bf16.mxu1 %v4365_v0 }
 0x10e   : > { %v507_v47 = vpop.f32.mrf.mxu1  ;;  %2896 = vmatmul.mubr.msk.bf16.vlgmr.msra.gmra.mxu1 %vm466_vm0, %v3585_v1  ;;  %v613_v63 = vpop.f32.mrf.mxu0 }
 0x10f   : > { %2149 = vmatprep.mubr.bf16.mxu1 %v4365_v0 }
 0x110   : > { %v509_v2 = vpop.f32.mrf.mxu1  ;;  %v615_v3 = vpop.f32.mrf.mxu0 }
 0x112   : > { %v511_v4 = vpop.f32.mrf.mxu1  ;;  %v617_v5 = vpop.f32.mrf.mxu0 }
 0x114   : > { %v513_v6 = vpop.f32.mrf.mxu1  ;;  %v619_v7 = vpop.f32.mrf.mxu0 }
 0x116   : > { %v517_v8 = vpop.f32.mrf.mxu1  ;;  %2897 = vmatmul.mubr.msk.bf16.gmra.mxu1 %vm466_vm0, %v3597_v11  ;;  %v623_v9 = vpop.f32.mrf.mxu0 }
 0x118   : > { %v519_v10 = vpop.f32.mrf.mxu1  ;;  %v625_v12 = vpop.f32.mrf.mxu0 }
 0x11a   : > { %v521_v13 = vpop.f32.mrf.mxu1  ;;  %v627_v14 = vpop.f32.mrf.mxu0 }
 0x11c   : > { %v523_v16 = vpop.f32.mrf.mxu1  ;;  %v629_v1 = vpop.f32.mrf.mxu0 }
 0x11e   : > { %v560_v17 = vpop.f32.mrf.mxu1  ;;  %v765_v18 = vpop.f32.mrf.mxu0 }
 0x11f   : > { %v766_v19 = vadd.f32 %v765_v18, %v507_v47  ;;  %v3756_v47 = vld [vmem:[%s4399_s3] sm:$0xff]  ;;  %v3060_v18 = vld [vmem:[%s4401_s4 + $0x70] ss:$8 sps:$4 sm:$0xff]  }
 0x120   : > { %v562_v20 = vpop.f32.mrf.mxu1  ;;  %v767_v21 = vpop.f32.mrf.mxu0 }
 0x121   : > { %v768_v22 = vadd.f32 %v767_v21, %v509_v2 }
 0x122   : > { %v564_v23 = vpop.f32.mrf.mxu1  ;;  %v769_v24 = vpop.f32.mrf.mxu0 }
 0x123   : > { %v3700_v25 = vadd.f32 %v769_v24, %v511_v4 }
 0x124   : > { %v3702_v26 = vpop.f32.mrf.mxu1  ;;  %v771_v11 = vpop.f32.mrf.mxu0 }
 0x125   : > { %v3704_v27 = vadd.f32 %v771_v11, %v513_v6 }
 0x126   : > { %v3706_v29 = vpop.f32.mrf.mxu1  ;;  %v775_v30 = vpop.f32.mrf.mxu0 }
 0x127   : > { %v3708_v31 = vadd.f32 %v775_v30, %v517_v8 }
 0x128   : > { %v3710_v32 = vpop.f32.mrf.mxu1  ;;  %v777_v33 = vpop.f32.mrf.mxu0 }
 0x129   : > { %v3712_v34 = vadd.f32 %v777_v33, %v519_v10 }
 0x12a   : > { %v3714_v35 = vpop.f32.mrf.mxu1  ;;  %v779_v36 = vpop.f32.mrf.mxu0 }
 0x12b   : > { %v3716_v37 = vadd.f32 %v779_v36, %v521_v13 }
 0x12c   : > { %v3718_v39 = vpop.f32.mrf.mxu1  ;;  %v781_v40 = vpop.f32.mrf.mxu0 }
 0x12d   : > { %v3720_v41 = vadd.f32 %v781_v40, %v523_v16 }
 0x12e   : > { %v3722_v42 = vpop.f32.mrf.mxu1  ;;  %v871_v43 = vpop.f32.mrf.mxu0 }
 0x12f   : > { %v3724_v44 = vadd.f32 %v871_v43, %v613_v63 }
 0x130   : > { %v3726_v45 = vpop.f32.mrf.mxu1  ;;  %v873_v46 = vpop.f32.mrf.mxu0 }
 0x131   : > { %v3728_v48 = vadd.f32 %v873_v46, %v615_v3  ;;  %v3763_v3 = vsub.s32 1, %v3740_v56 }
 0x132   : > { %v3730_v49 = vpop.f32.mrf.mxu1  ;;  %v875_v51 = vpop.f32.mrf.mxu0 }
 0x133   : > { %v3732_v52 = vadd.f32 %v875_v51, %v617_v5  ;;  %4400 = vst [vmem:[#allocation20_spill] sm:$0xff] %v3763_v3  ;;  %v3773_v13 = vrot.slane %v3756_v47, %v3763_v3 }
 0x134   : > { %v3734_v53 = vpop.f32.mrf.mxu1  ;;  %v877_v54 = vpop.f32.mrf.mxu0 }
 0x135   : > { %v3736_v55 = vadd.f32 %v877_v54, %v619_v7  ;;  %v1247_v7 = vrot.slane %v3756_v47, %v3751_v62 }
 0x136   : > { %v3738_v15 = vpop.f32.mrf.mxu1  ;;  %v881_v57 = vpop.f32.mrf.mxu0 }
 0x137   : > { %v3742_v58 = vadd.f32 %v881_v57, %v623_v9 }
 0x138   : > { %v3744_v59 = vpop.f32.mrf.mxu1  ;;  %v883_v28 = vpop.f32.mrf.mxu0 }
 0x139   : > { %v3746_v60 = vadd.f32 %v883_v28, %v625_v12 }
 0x13a   : > { %v3748_v61 = vpop.f32.mrf.mxu1  ;;  %v885_v38 = vpop.f32.mrf.mxu0 }
 0x13b   : > { %v3758_v63 = vadd.f32 %v885_v38, %v627_v14  ;;  %v3062_v14 = vld [vmem:[%s4401_s4 + $0x74] ss:$8 sps:$4 sm:$0xff]  }
 0x13c   : > { %v3760_v2 = vpop.f32.mrf.mxu1  ;;  %v887_v4 = vpop.f32.mrf.mxu0  ;;  %2444 = vmatprep.subr.bf16.mxu0 %v3062_v14 }
 0x13d   : > { %v3765_v5 = vadd.f32 %v887_v4, %v629_v1  ;;  %2445 = vmatpush1.bf16.msra.mxu0 %v3060_v18 }
 0x13e   : > { %v818_v6 = vpop.f32.mrf.mxu1  ;;  %v1032_v9 = vpop.f32.mrf.mxu0 }
 0x13f   : > { %v3769_v8 = vadd.f32 %v818_v6, %v560_v17  ;;  %v1210_v10 = vadd.f32 %v1032_v9, %v766_v19  ;;  %v3068_v6 = vld [vmem:[%s4401_s4 + $0x54] ss:$8 sps:$4 sm:$0xff]  }
 0x140   : > { %v820_v12 = vpop.f32.mrf.mxu1  ;;  %v1034_v1 = vpop.f32.mrf.mxu0 }
 0x141   : > { %v3778_v16 = vadd.f32 %v820_v12, %v562_v20  ;;  %v1284_v17 = vadd.f32 %v1247_v7, %v1210_v10  ;;  %v1211_v21 = vadd.f32 %v1034_v1, %v768_v22  ;;  %v3065_v20 = vld [vmem:[%s4401_s4 + $0x64] ss:$8 sps:$4 sm:$0xff]   ;;  %v3063_v22 = vld [vmem:[%s4401_s4 + $0x60] ss:$8 sps:$4 sm:$0xff]  }
 0x142   : > { %v822_v24 = vpop.f32.mrf.mxu1  ;;  %v1036_v11 = vpop.f32.mrf.mxu0  ;;  %2446 = vmatprep.subr.bf16.mxu0 %v3065_v20 }
 0x143   : > { %v3783_v19 = vadd.f32 %v822_v24, %v564_v23  ;;  %v1285_v30 = vadd.f32 %v3773_v13, %v1211_v21  ;;  %v1218_v33 = vadd.f32 %v1036_v11, %v3700_v25  ;;  %v1316_v23 = vmax.f32 %v1284_v17, 0.0  ;;  %2447 = vmatpush1.bf16.msra.mxu0 %v3063_v22 }
 0x144   : > { %v824_v36 = vpop.f32.mrf.mxu1  ;;  %v1038_v43 = vpop.f32.mrf.mxu0  ;;  %2448 = vmatprep.subr.bf16.mxu0 %v3068_v6 }
 0x145   : > { %v3791_v40 = vadd.f32 %v824_v36, %v3702_v26  ;;  %v1317_v46 = vmax.f32 %v1285_v30, 0.0  ;;  %v1292_v50 = vadd.f32 %v1247_v7, %v1218_v33  ;;  %v1219_v51 = vadd.f32 %v1038_v43, %v3704_v27  ;;  %v3071_v30 = vld [vmem:[%s4401_s4 + $0x44] ss:$8 sps:$4 sm:$0xff]  }
 0x146   : > { %v828_v54 = vpop.f32.mrf.mxu1  ;;  %v1042_v57 = vpop.f32.mrf.mxu0 }
 0x147   : > { %v3798_v25 = vadd.f32 %v828_v54, %v3706_v29  ;;  %v3800_v28 = vadd.f32 %v1317_v46, %v1316_v23  ;;  %v1293_v26 = vadd.f32 %v3773_v13, %v1219_v51  ;;  %v1226_v38 = vadd.f32 %v1042_v57, %v3708_v31  ;;  %v3066_v29 = vld [vmem:[%s4401_s4 + $0x50] ss:$8 sps:$4 sm:$0xff]  }
 0x148   : > { %v830_v4 = vpop.f32.mrf.mxu1  ;;  %v1044_v9 = vpop.f32.mrf.mxu0  ;;  %v1324_v10 = vmax.f32 %v1292_v50, 0.0  ;;  %2449 = vmatpush1.bf16.msra.mxu0 %v3066_v29 }
 0x149   : > { %v3808_v27 = vadd.f32 %v830_v4, %v3710_v32  ;;  %v1325_v12 = vmax.f32 %v1293_v26, 0.0  ;;  %v1300_v14 = vadd.f32 %v1247_v7, %v1226_v38  ;;  %v1227_v1 = vadd.f32 %v1044_v9, %v3712_v34  ;;  %2450 = vmatprep.subr.bf16.mxu0 %v3071_v30 }
 0x14a   : > { %v832_v18 = vpop.f32.mrf.mxu1  ;;  %v1046_v17 = vpop.f32.mrf.mxu0  ;;  %v4370_v30 = vsub.s32 4, %v3740_v56 }
 0x14b   : > { %v3815_v31 = vadd.f32 %v832_v18, %v3714_v35  ;;  %v3817_v21 = vadd.f32 %v1325_v12, %v1324_v10  ;;  %v1301_v32 = vadd.f32 %v3773_v13, %v1227_v1  ;;  %v1234_v24 = vadd.f32 %v1046_v17, %v3716_v37  ;;  %v3069_v35 = vld [vmem:[%s4401_s4 + $0x40] ss:$8 sps:$4 sm:$0xff]   ;;  %v3077_v10 = vld [vmem:[%s4401_s4 + $0x24] ss:$8 sps:$4 sm:$0xff]  }
 0x14c   : > { %v834_v11 = vpop.f32.mrf.mxu1  ;;  %v1048_v33 = vpop.f32.mrf.mxu0  ;;  %v1332_v36 = vmax.f32 %v1300_v14, 0.0  ;;  %2451 = vmatpush1.bf16.msra.mxu0 %v3069_v35 }
 0x14d   : > { %v3825_v34 = vadd.f32 %v834_v11, %v3718_v39  ;;  %v1333_v20 = vmax.f32 %v1301_v32, 0.0  ;;  %v1308_v43 = vadd.f32 %v1247_v7, %v1234_v24  ;;  %v1235_v22 = vadd.f32 %v1048_v33, %v3720_v41  ;;  %v3074_v7 = vld [vmem:[%s4401_s4 + $0x34] ss:$8 sps:$4 sm:$0xff]  }
 0x14e   : > { %v924_v23 = vpop.f32.mrf.mxu1  ;;  %v1138_v46 = vpop.f32.mrf.mxu0  ;;  %2452 = vmatprep.subr.bf16.mxu0 %v3074_v7  ;;  %v3080_v32 = vld [vmem:[%s4401_s4 + $0x14] ss:$8 sps:$4 sm:$0xff]   ;;  %v4371_v11 = vsub.s32 2, %v3740_v56 }
 0x14f   : > { %v3832_v37 = vadd.f32 %v924_v23, %v3722_v42  ;;  %v3834_v50 = vadd.f32 %v1333_v20, %v1332_v36  ;;  %v1309_v39 = vadd.f32 %v3773_v13, %v1235_v22  ;;  %v3838_v51 = vadd.f32 %v1138_v46, %v3724_v44  ;;  %v3072_v42 = vld [vmem:[%s4401_s4 + $0x30] ss:$8 sps:$4 sm:$0xff]  }
 0x150   : > { %v926_v54 = vpop.f32.mrf.mxu1  ;;  %v1140_v57 = vpop.f32.mrf.mxu0  ;;  %v1340_v26 = vmax.f32 %v1308_v43, 0.0  ;;  %2453 = vmatpush1.bf16.msra.mxu0 %v3072_v42  ;;  %v4368_v20 = vsub.s32 5, %v3740_v56 }
 0x151   : > { %v3844_v41 = vadd.f32 %v926_v54, %v3726_v45  ;;  %v1341_v38 = vmax.f32 %v1309_v39, 0.0  ;;  %v1215_v13 = vadd.f32 %v1140_v57, %v3728_v48  ;;  %2454 = vmatprep.subr.bf16.mxu0 %v3077_v10  ;;  %v3081_v39 = vld [vmem:[%s4401_s4] ss:$8 sps:$4 sm:$0xff]  }
 0x152   : > { %v928_v4 = vpop.f32.mrf.mxu1  ;;  %v1142_v6 = vpop.f32.mrf.mxu0 }
 0x153   : > { %v3851_v44 = vadd.f32 %v928_v4, %v3730_v49  ;;  %v3853_v9 = vadd.f32 %v1341_v38, %v1340_v26  ;;  %v1222_v45 = vadd.f32 %v1142_v6, %v3732_v52  ;;  %v3075_v49 = vld [vmem:[%s4401_s4 + $0x20] ss:$8 sps:$4 sm:$0xff]   ;;  %v3925_v26 = vrot.slane %v3756_v47, %v4368_v20 }
 0x154   : > { %v930_v29 = vpop.f32.mrf.mxu1  ;;  %v1144_v48 = vpop.f32.mrf.mxu0  ;;  %2455 = vmatpush1.bf16.msra.mxu0 %v3075_v49 }
 0x155   : > { %v3860_v12 = vadd.f32 %v930_v29, %v3734_v53  ;;  %v3866_v14 = vadd.f32 %v1144_v48, %v3736_v55  ;;  %2456 = vmatprep.subr.bf16.mxu0 %v3080_v32 }
 0x156   : > { %v934_v1 = vpop.f32.mrf.mxu1  ;;  %v1148_v18 = vpop.f32.mrf.mxu0 }
 0x157   : > { %v3869_v52 = vadd.f32 %v934_v1, %v3738_v15  ;;  %v3872_v17 = vadd.f32 %v1148_v18, %v3742_v58  ;;  %v3078_v15 = vld [vmem:[%s4401_s4 + $0x10] ss:$8 sps:$4 sm:$0xff]   ;;  %v1289_v18 = vadd.f32 %v3925_v26, %v1215_v13 }
 0x158   : > { %v936_v53 = vpop.f32.mrf.mxu1  ;;  %v1150_v55 = vpop.f32.mrf.mxu0  ;;  %2457 = vmatpush1.bf16.msra.mxu0 %v3078_v15 }
 0x159   : > { %v3878_v24 = vadd.f32 %v936_v53, %v3744_v59  ;;  %v3886_v58 = vadd.f32 %v1150_v55, %v3746_v60  ;;  %v4369_v59 = vsub.s32 3, %v3740_v56  ;;  %v3083_v60 = vld [vmem:[%s4401_s4 + $0x4] ss:$8 sps:$4 sm:$0xff]   ;;  %v1321_v13 = vmax.f32 %v1289_v18, 0.0 }
 0x15a   : > { %v938_v33 = vpop.f32.mrf.mxu1  ;;  %v1152_v36 = vpop.f32.mrf.mxu0  ;;  %2458 = vmatprep.subr.bf16.mxu0 %v3083_v60 }
 0x15b   : > { %v3889_v35 = vadd.f32 %v938_v33, %v3748_v61  ;;  %v3894_v43 = vadd.f32 %v1152_v36, %v3758_v63  ;;  %v1255_v61 = vrot.slane %v3756_v47, %v4371_v11  ;;  %v3911_v63 = vrot.slane %v3756_v47, %v4370_v30 }
 0x15c   : > { %v940_v22 = vpop.f32.mrf.mxu1  ;;  %v1154_v46 = vpop.f32.mrf.mxu0  ;;  %v1259_v42 = vrot.slane %v3756_v47, %v4369_v59  ;;  %2459 = vmatpush1.bf16.msra.mxu0 %v3081_v39 }
 0x15d   : > { %v3900_v23 = vadd.f32 %v940_v22, %v3760_v2  ;;  %v3914_v54 = vadd.f32 %v1154_v46, %v3765_v5 }
 0x15e   : > { %v1085_v7 = vpop.f32.mrf.mxu1  ;;  %v3917_v57 = vpop.f32.mrf.mxu0 }
 0x15f   : > { %v1212_v2 = vadd.f32 %v1085_v7, %v3769_v8  ;;  %v1288_v8 = vadd.f32 %v3911_v63, %v3838_v51  ;;  %v1296_v51 = vadd.f32 %v3911_v63, %v1222_v45 }
 0x160   : > { %v1087_v38 = vpop.f32.mrf.mxu1  ;;  %v3928_v6 = vpop.f32.mrf.mxu0 }
 0x161   : > { %v1286_v4 = vadd.f32 %v1255_v61, %v1212_v2  ;;  %v1213_v5 = vadd.f32 %v1087_v38, %v3778_v16  ;;  %v1320_v36 = vmax.f32 %v1288_v8, 0.0 }
 0x162   : > { %v1089_v29 = vpop.f32.mrf.mxu1  ;;  %v3933_v1 = vpop.f32.mrf.mxu0 }
 0x163   : > { %v1318_v10 = vmax.f32 %v1286_v4, 0.0  ;;  %v1287_v48 = vadd.f32 %v1259_v42, %v1213_v5  ;;  %v1220_v49 = vadd.f32 %v1089_v29, %v3783_v19  ;;  %v1328_v29 = vmax.f32 %v1296_v51, 0.0 }
 0x164   : > { %v1091_v53 = vpop.f32.mrf.mxu1  ;;  %v3938_v33 = vpop.f32.mrf.mxu0 }
 0x165   : > { %v1356_v32 = vadd.f32 %v3800_v28, %v1318_v10  ;;  %v1319_v55 = vmax.f32 %v1287_v48, 0.0  ;;  %v1294_v15 = vadd.f32 %v1255_v61, %v1220_v49  ;;  %v1221_v16 = vadd.f32 %v1091_v53, %v3791_v40 }
 0x166   : > { %v1095_v22 = vpop.f32.mrf.mxu1  ;;  %v3942_v7 = vpop.f32.mrf.mxu0  ;;  %v1297_v28 = vadd.f32 %v3925_v26, %v3866_v14  ;;  %v4367_v40 = vsub.s32 6, %v3740_v56  ;;  %v4366_v48 = vsub.s32 7, %v3740_v56 }
 0x167   : > { %v1360_v60 = vadd.f32 %v1356_v32, %v1319_v55  ;;  %v1326_v46 = vmax.f32 %v1294_v15, 0.0  ;;  %v1295_v19 = vadd.f32 %v1259_v42, %v1221_v16  ;;  %v1228_v39 = vadd.f32 %v1095_v22, %v3798_v25 }
 0x168   : > { %v1097_v2 = vpop.f32.mrf.mxu1  ;;  %v3948_v8 = vpop.f32.mrf.mxu0  ;;  %v1329_v55 = vmax.f32 %v1297_v28, 0.0 }
 0x169   : > { %v1364_v38 = vadd.f32 %v1360_v60, %v1320_v36  ;;  %v1357_v4 = vadd.f32 %v3817_v21, %v1326_v46  ;;  %v1327_v5 = vmax.f32 %v1295_v19, 0.0  ;;  %v1302_v45 = vadd.f32 %v1255_v61, %v1228_v39 }
 0x16a   : > { %v1229_v10 = vadd.f32 %v1097_v2, %v3808_v27  ;;  %v1099_v25 = vpop.f32.mrf.mxu1  ;;  %v3953_v53 = vpop.f32.mrf.mxu0  ;;  %v1304_v21 = vadd.f32 %v3911_v63, %v3872_v17  ;;  %v3960_v27 = vrot.slane %v3756_v47, %v4367_v40  ;;  %v1305_v46 = vadd.f32 %v3925_v26, %v3886_v58 }
 0x16b   : > { %v1361_v49 = vadd.f32 %v1357_v4, %v1327_v5  ;;  %v1334_v18 = vmax.f32 %v1302_v45, 0.0  ;;  %v1236_v14 = vadd.f32 %v1099_v25, %v3815_v31  ;;  %v1368_v32 = vadd.f32 %v1364_v38, %v1321_v13 }
 0x16c   : > { %v1303_v15 = vadd.f32 %v1259_v42, %v1229_v10  ;;  %v1101_v16 = vpop.f32.mrf.mxu1  ;;  %v3964_v60 = vpop.f32.mrf.mxu0  ;;  %v1312_v17 = vadd.f32 %v3911_v63, %v3894_v43  ;;  %v1275_v13 = vrot.slane %v3756_v47, %v4366_v48  ;;  %v1336_v38 = vmax.f32 %v1304_v21, 0.0 }
 0x16d   : > { %v1365_v36 = vadd.f32 %v1361_v49, %v1328_v29  ;;  %v1358_v51 = vadd.f32 %v3834_v50, %v1334_v18  ;;  %v1310_v22 = vadd.f32 %v1255_v61, %v1236_v14  ;;  %v1237_v31 = vadd.f32 %v1101_v16, %v3825_v34 }
 0x16e   : > { %v1335_v19 = vmax.f32 %v1303_v15, 0.0  ;;  %v1191_v39 = vpop.f32.mrf.mxu1  ;;  %v3974_v61 = vpop.f32.mrf.mxu0  ;;  %v1313_v58 = vadd.f32 %v3925_v26, %v3914_v54 }
 0x16f   : > { %v1342_v28 = vmax.f32 %v1310_v22, 0.0  ;;  %v1311_v2 = vadd.f32 %v1259_v42, %v1237_v31  ;;  %v1216_v50 = vadd.f32 %v1191_v39, %v3832_v37  ;;  %v1369_v34 = vadd.f32 %v1365_v36, %v1329_v55 }
 0x170   : > { %v1362_v4 = vadd.f32 %v1358_v51, %v1335_v19  ;;  %v1193_v5 = vpop.f32.mrf.mxu1  ;;  %v3981_v29 = vpop.f32.mrf.mxu0  ;;  %v1337_v42 = vmax.f32 %v1305_v46, 0.0  ;;  %v1344_v37 = vmax.f32 %v1312_v17, 0.0  ;;  %v1345_v55 = vmax.f32 %v1313_v58, 0.0 }
 0x171   : > { %v1359_v43 = vadd.f32 %v3853_v9, %v1342_v28  ;;  %v1343_v63 = vmax.f32 %v1311_v2, 0.0  ;;  %v1290_v45 = vadd.f32 %v3960_v27, %v1216_v50  ;;  %v1217_v47 = vadd.f32 %v1193_v5, %v3844_v41 }
 0x172   : > { %v1366_v10 = vadd.f32 %v1362_v4, %v1336_v38  ;;  %v1195_v25 = vpop.f32.mrf.mxu1  ;;  %v3984_v26 = vpop.f32.mrf.mxu0 }
 0x173   : > { %v1363_v49 = vadd.f32 %v1359_v43, %v1343_v63  ;;  %v1322_v18 = vmax.f32 %v1290_v45, 0.0  ;;  %v1291_v14 = vadd.f32 %v1275_v13, %v1217_v47  ;;  %v1224_v54 = vadd.f32 %v1195_v25, %v3851_v44 }
 0x174   : > { %v1197_v9 = vpop.f32.mrf.mxu1  ;;  %v1370_v21 = vadd.f32 %v1366_v10, %v1337_v42  ;;  %v3987_v51 = vpop.f32.mrf.mxu0 }
 0x175   : > { %v1367_v15 = vadd.f32 %v1363_v49, %v1344_v37  ;;  %v1372_v16 = vadd.f32 %v1368_v32, %v1322_v18  ;;  %v1323_v36 = vmax.f32 %v1291_v14, 0.0  ;;  %v1298_v41 = vadd.f32 %v3960_v27, %v1224_v54 }
 0x176   : > { %v1225_v22 = vadd.f32 %v1197_v9, %v3860_v12  ;;  %v1201_v31 = vpop.f32.mrf.mxu1  ;;  %v3993_v19 = vpop.f32.mrf.mxu0 }
 0x177   : > { %v3990_v46 = vadd.f32 %v1372_v16, %v1323_v36  ;;  %v1330_v17 = vmax.f32 %v1298_v41, 0.0  ;;  %v1232_v44 = vadd.f32 %v1201_v31, %v3869_v52  ;;  %v1371_v39 = vadd.f32 %v1367_v15, %v1345_v55 }
 0x178   : > { %v1299_v28 = vadd.f32 %v1275_v13, %v1225_v22  ;;  %v1203_v2 = vpop.f32.mrf.mxu1  ;;  %v3997_v58 = vpop.f32.mrf.mxu0 }
 0x179   : > { %v1373_v50 = vadd.f32 %v1369_v34, %v1330_v17  ;;  %v1306_v32 = vadd.f32 %v3960_v27, %v1232_v44  ;;  %v1233_v38 = vadd.f32 %v1203_v2, %v3878_v24 }
 0x17a   : > { %v1331_v4 = vmax.f32 %v1299_v28, 0.0  ;;  %v1205_v12 = vpop.f32.mrf.mxu1  ;;  %v4000_v45 = vpop.f32.mrf.mxu0 }
 0x17b   : > { %v1338_v5 = vmax.f32 %v1306_v32, 0.0  ;;  %v1307_v43 = vadd.f32 %v1275_v13, %v1233_v38  ;;  %v1240_v63 = vadd.f32 %v1205_v12, %v3889_v35 }
 0x17c   : > { %v4002_v52 = vadd.f32 %v1373_v50, %v1331_v4  ;;  %v1207_v47 = vpop.f32.mrf.mxu1  ;;  %v4006_v24 = vpop.f32.mrf.mxu0 }
 0x17d   : > { %v1374_v42 = vadd.f32 %v1370_v21, %v1338_v5  ;;  %v1339_v37 = vmax.f32 %v1307_v43, 0.0  ;;  %v1314_v34 = vadd.f32 %v3960_v27, %v1240_v63  ;;  %v1241_v10 = vadd.f32 %v1207_v47, %v3900_v23 }
 0x17e   : > { %v4008_v25 = vpop.f32.mrf.mxu1  ;;  %v1722_v35 = vpop.f32.mrf.mxu0 }
 0x17f   : > { %v4010_v49 = vadd.f32 %v1374_v42, %v1339_v37  ;;  %v1346_v18 = vmax.f32 %v1314_v34, 0.0  ;;  %v1315_v14 = vadd.f32 %v1275_v13, %v1241_v10 }
 0x180   : > { %v4012_v54 = vpop.f32.mrf.mxu1  ;;  %v1724_v15 = vpop.f32.mrf.mxu0 }
 0x181   : > { %v1375_v55 = vadd.f32 %v1371_v39, %v1346_v18  ;;  %v1347_v9 = vmax.f32 %v1315_v14, 0.0  ;;  %v4059_v18 = vld [vmem:[%s4399_s3 + $0x8] sm:$0xff]  ;;  %v1725_v20 = vadd.f32 %v1724_v15, %v3928_v6 }
 0x182   : > { %v4014_v21 = vpop.f32.mrf.mxu1  ;;  %v1726_v27 = vpop.f32.mrf.mxu0  ;;  %v2197_v48 = vrot.slane %v4059_v18, %v3751_v62  ;;  %v2201_v11 = vrot.slane %v4059_v18, %v3763_v3 }
 0x183   : > { %v4016_v16 = vadd.f32 %v1375_v55, %v1347_v9  ;;  %v1723_v9 = vadd.f32 %v1722_v35, %v3917_v57 }
 0x184   : > { %v4018_v23 = vpop.f32.mrf.mxu1  ;;  %v1728_v36 = vpop.f32.mrf.mxu0 }
 0x186   : > { %v4020_v41 = vpop.f32.mrf.mxu1  ;;  %v1732_v22 = vpop.f32.mrf.mxu0 }
 0x188   : > { %v4022_v31 = vpop.f32.mrf.mxu1  ;;  %v1734_v13 = vpop.f32.mrf.mxu0 }
 0x18a   : > { %v4024_v17 = vpop.f32.mrf.mxu1  ;;  %v1736_v44 = vpop.f32.mrf.mxu0 }
 0x18c   : > { %v4026_v39 = vpop.f32.mrf.mxu1  ;;  %v1738_v28 = vpop.f32.mrf.mxu0 }
 0x18e   : > { %v4028_v2 = vpop.f32.mrf.mxu1  ;;  %v4030_v50 = vpop.f32.mrf.mxu0 }
 0x18f   : > { %4402 = vst [vmem:[#allocation21_spill] sm:$0xff] %v4028_v2 }
 0x190   : > { %v4032_v32 = vpop.f32.mrf.mxu1  ;;  %v4034_v38 = vpop.f32.mrf.mxu0 }
 0x191   : > { %4403 = vst [vmem:[#allocation22_spill] sm:$0xff] %v4032_v32 }
 0x192   : > { %v4036_v4 = vpop.f32.mrf.mxu1  ;;  %v4038_v12 = vpop.f32.mrf.mxu0 }
 0x193   : > { %4404 = vst [vmem:[#allocation23_spill] sm:$0xff] %v4036_v4 }
 0x194   : > { %v4040_v5 = vpop.f32.mrf.mxu1  ;;  %v4042_v43 = vpop.f32.mrf.mxu0 }
 0x195   : > { %4405 = vst [vmem:[#allocation24_spill] sm:$0xff] %v4040_v5  ;;  %v1729_v5 = vadd.f32 %v1728_v36, %v3938_v33 }
 0x196   : > { %v4044_v63 = vpop.f32.mrf.mxu1  ;;  %v4046_v47 = vpop.f32.mrf.mxu0 }
 0x197   : > { %4406 = vst [vmem:[#allocation25_spill] sm:$0xff] %v4044_v63 }
 0x198   : > { %v4048_v42 = vpop.f32.mrf.mxu1  ;;  %v4050_v37 = vpop.f32.mrf.mxu0 }
 0x199   : > { %4407 = vst [vmem:[#allocation26_spill] sm:$0xff] %v4048_v42 }
 0x19a   : > { %v4052_v34 = vpop.f32.mrf.mxu1  ;;  %v4054_v10 = vpop.f32.mrf.mxu0 }
 0x19b   : > { %4408 = vst [vmem:[#allocation27_spill] sm:$0xff] %v4052_v34 }
 0x19c   : > { %v4061_v14 = vpop.f32.mrf.mxu1  ;;  %v4063_v55 = vpop.f32.mrf.mxu0 }
 0x19d   : > { %4409 = vst [vmem:[#allocation28_spill] sm:$0xff] %v4061_v14  ;;  %v1727_v14 = vadd.f32 %v1726_v27, %v3933_v1 }
 0x19e   : > { %v4066_v0 = vpop.f32.mrf.mxu1  ;;  %v1982_v40 = vpop.f32.mrf.mxu0 }
 0x19f   : > { %v2160_v59 = vadd.f32 %v1982_v40, %v1723_v9  ;;  %v1733_v40 = vadd.f32 %v1732_v22, %v3942_v7  ;;  %v1737_v7 = vadd.f32 %v1736_v44, %v3953_v53 }
 0x1a0   : > { %v4071_v30 = vpop.f32.mrf.mxu1  ;;  %v1984_v34 = vpop.f32.mrf.mxu0 }
 0x1a1   : > { %v2234_v42 = vadd.f32 %v2197_v48, %v2160_v59  ;;  %v2161_v63 = vadd.f32 %v1984_v34, %v1725_v20  ;;  %v1735_v20 = vadd.f32 %v1734_v13, %v3948_v8  ;;  %v1739_v8 = vadd.f32 %v1738_v28, %v3964_v60 }
 0x1a2   : > { %v4076_v57 = vpop.f32.mrf.mxu1  ;;  %v1986_v35 = vpop.f32.mrf.mxu0 }
 0x1a3   : > { %v2266_v62 = vmax.f32 %v2234_v42, 0.0  ;;  %v2235_v4 = vadd.f32 %v2201_v11, %v2161_v63  ;;  %v2168_v32 = vadd.f32 %v1986_v35, %v1727_v14 }
 0x1a4   : > { %v4079_v6 = vpop.f32.mrf.mxu1  ;;  %v1988_v15 = vpop.f32.mrf.mxu0 }
 0x1a5   : > { %v2298_v9 = vadd.f32 %v2266_v62, %v3990_v46  ;;  %v2267_v3 = vmax.f32 %v2235_v4, 0.0  ;;  %v2242_v2 = vadd.f32 %v2197_v48, %v2168_v32  ;;  %v2169_v1 = vadd.f32 %v1988_v15, %v1729_v5 }
 0x1a6   : > { %v4083_v59 = vpop.f32.mrf.mxu1  ;;  %v1992_v27 = vpop.f32.mrf.mxu0 }
 0x1a7   : > { %v4086_v34 = vadd.f32 %v2298_v9, %v2267_v3  ;;  %v2274_v33 = vmax.f32 %v2242_v2, 0.0  ;;  %v2243_v36 = vadd.f32 %v2201_v11, %v2169_v1  ;;  %v2176_v63 = vadd.f32 %v1992_v27, %v1733_v40 }
 0x1a8   : > { %v4088_v42 = vpop.f32.mrf.mxu1  ;;  %v1994_v22 = vpop.f32.mrf.mxu0 }
 0x1a9   : > { %v2299_v62 = vadd.f32 %v2274_v33, %v4002_v52  ;;  %v2275_v46 = vmax.f32 %v2243_v36, 0.0  ;;  %v2250_v32 = vadd.f32 %v2197_v48, %v2176_v63  ;;  %v2177_v4 = vadd.f32 %v1994_v22, %v1735_v20 }
 0x1aa   : > { %v4092_v5 = vpop.f32.mrf.mxu1  ;;  %v1996_v13 = vpop.f32.mrf.mxu0 }
 0x1ab   : > { %v4095_v3 = vadd.f32 %v2299_v62, %v2275_v46  ;;  %v2282_v2 = vmax.f32 %v2250_v32, 0.0  ;;  %v2251_v14 = vadd.f32 %v2201_v11, %v2177_v4  ;;  %v2184_v35 = vadd.f32 %v1996_v13, %v1737_v7 }
 0x1ac   : > { %v4097_v40 = vpop.f32.mrf.mxu1  ;;  %v1998_v15 = vpop.f32.mrf.mxu0  ;;  %v1829_v4 = vadd.f32 %v4030_v50, %v3974_v61  ;;  %v4410_v13 = vsub.s32 2, %v3740_v56  ;;  %v1778_v50 = vadd.f32 %v4071_v30, %v4012_v54  ;;  %v1833_v54 = vadd.f32 %v4038_v12, %v3984_v26 }
 0x1ad   : > { %v2300_v53 = vadd.f32 %v2282_v2, %v4010_v49  ;;  %v2283_v44 = vmax.f32 %v2251_v14, 0.0  ;;  %v2258_v52 = vadd.f32 %v2197_v48, %v2184_v35  ;;  %v2185_v9 = vadd.f32 %v1998_v15, %v1739_v8 }
 0x1ae   : > { %v4100_v1 = vpop.f32.mrf.mxu1  ;;  %v2088_v7 = vpop.f32.mrf.mxu0  ;;  %v1776_v8 = vadd.f32 %v4066_v0, %v4008_v25  ;;  %v4128_v2 = vrot.slane %v4059_v18, %v4410_v13  ;;  %v1831_v14 = vadd.f32 %v4034_v38, %v3981_v29  ;;  %v4411_v15 = vsub.s32 4, %v3740_v56 }
 0x1af   : > { %v4102_v20 = vadd.f32 %v2300_v53, %v2283_v44  ;;  %v2290_v27 = vmax.f32 %v2258_v52, 0.0  ;;  %v2259_v60 = vadd.f32 %v2201_v11, %v2185_v9  ;;  %v2164_v35 = vadd.f32 %v2088_v7, %v1829_v4 }
 0x1b0   : > { %v4104_v28 = vpop.f32.mrf.mxu1  ;;  %v2090_v62 = vpop.f32.mrf.mxu0  ;;  %v4135_v53 = vrot.slane %v4059_v18, %v4411_v15  ;;  %v4412_v25 = vsub.s32 3, %v3740_v56  ;;  %v4413_v29 = vsub.s32 5, %v3740_v56  ;;  %v1839_v15 = vadd.f32 %v4046_v47, %v3993_v19 }
 0x1b1   : > { %v2301_v33 = vadd.f32 %v2290_v27, %v4016_v16  ;;  %v2291_v36 = vmax.f32 %v2259_v60, 0.0  ;;  %v2165_v9 = vadd.f32 %v2090_v62, %v1831_v14  ;;  %v1780_v60 = vadd.f32 %v4076_v57, %v4014_v21 }
 0x1b2   : > { %v4107_v63 = vpop.f32.mrf.mxu1  ;;  %v2092_v11 = vpop.f32.mrf.mxu0  ;;  %v4142_v52 = vrot.slane %v4059_v18, %v4412_v25  ;;  %v4147_v38 = vrot.slane %v4059_v18, %v4413_v29  ;;  %v4414_v62 = vsub.s32 6, %v3740_v56  ;;  %v1782_v21 = vadd.f32 %v4079_v6, %v4018_v23 }
 0x1b3   : > { %v4109_v22 = vadd.f32 %v2301_v33, %v2291_v36  ;;  %v2238_v36 = vadd.f32 %v4135_v53, %v2164_v35  ;;  %v1835_v35 = vadd.f32 %v4042_v43, %v3987_v51  ;;  %v1841_v25 = vadd.f32 %v4050_v37, %v3997_v58 }
 0x1b4   : > { %v4111_v49 = vpop.f32.mrf.mxu1  ;;  %v2094_v44 = vpop.f32.mrf.mxu0  ;;  %v4158_v4 = vrot.slane %v4059_v18, %v4414_v62  ;;  %v1843_v51 = vadd.f32 %v4054_v10, %v4000_v45  ;;  %v2172_v19 = vadd.f32 %v2092_v11, %v1833_v54  ;;  %v1792_v54 = vadd.f32 %v4097_v40, %v4026_v39 }
 0x1b5   : > { %v2270_v43 = vmax.f32 %v2238_v36, 0.0 }
 0x1b6   : > { %v4113_v48 = vpop.f32.mrf.mxu1  ;;  %v2098_v57 = vpop.f32.mrf.mxu0  ;;  %v2246_v36 = vadd.f32 %v4135_v53, %v2172_v19 }
 0x1b7   : > { %v2180_v58 = vadd.f32 %v2098_v57, %v1839_v15  ;;  %v2173_v57 = vadd.f32 %v2094_v44, %v1835_v35 }
 0x1b8   : > { %v4115_v46 = vpop.f32.mrf.mxu1  ;;  %v2100_v29 = vpop.f32.mrf.mxu0 }
 0x1ba   : > { %v4117_v32 = vpop.f32.mrf.mxu1  ;;  %v2102_v40 = vpop.f32.mrf.mxu0 }
 0x1bc   : > { %v4121_v16 = vpop.f32.mrf.mxu1 }
 0x1be   : > { %v2035_v61 = vpop.f32.mrf.mxu1 }
 0x1bf   : > { %v2162_v0 = vadd.f32 %v2035_v61, %v1776_v8  ;;  %v4415_v8 = vsub.s32 7, %v3740_v56  ;;  %v1786_v56 = vadd.f32 %v4083_v59, %v4020_v41 }
 0x1c0   : > { %v2037_v27 = vpop.f32.mrf.mxu1 }
 0x1c1   : > { %v2236_v33 = vadd.f32 %v4128_v2, %v2162_v0  ;;  %v2163_v30 = vadd.f32 %v2037_v27, %v1778_v50  ;;  %v4163_v13 = vrot.slane %v4059_v18, %v4415_v8  ;;  %v2239_v18 = vadd.f32 %v4147_v38, %v2165_v9 }
 0x1c2   : > { %v2039_v7 = vpop.f32.mrf.mxu1 }
 0x1c3   : > { %v2268_v14 = vmax.f32 %v2236_v33, 0.0  ;;  %v2237_v26 = vadd.f32 %v4142_v52, %v2163_v30  ;;  %v2170_v12 = vadd.f32 %v2039_v7, %v1780_v60  ;;  %v1790_v60 = vadd.f32 %v4092_v5, %v4024_v17 }
 0x1c4   : > { %v2041_v61 = vpop.f32.mrf.mxu1  ;;  %v2271_v33 = vmax.f32 %v2239_v18, 0.0  ;;  %v2181_v7 = vadd.f32 %v2100_v29, %v1841_v25  ;;  %v2104_v29 = vpop.f32.mrf.mxu0 }
 0x1c5   : > { %v2306_v50 = vadd.f32 %v4086_v34, %v2268_v14  ;;  %v2269_v23 = vmax.f32 %v2237_v26, 0.0  ;;  %v2244_v6 = vadd.f32 %v4128_v2, %v2170_v12  ;;  %v2171_v0 = vadd.f32 %v2041_v61, %v1782_v21  ;;  %v4416_v12 = vld [vmem:[#allocation21_spill] sm:$0xff]  ;;  %v4417_v61 = vld [vmem:[#allocation22_spill] sm:$0xff] }
 0x1c6   : > { %v2045_v47 = vpop.f32.mrf.mxu1  ;;  %v1788_v34 = vadd.f32 %v4088_v42, %v4022_v31  ;;  %v1845_v21 = vadd.f32 %v4063_v55, %v4006_v24  ;;  %v1882_v39 = vadd.f32 %v4100_v1, %v4416_v12  ;;  %v2255_v55 = vadd.f32 %v4147_v38, %v2181_v7 }
 0x1c7   : > { %v2310_v41 = vadd.f32 %v2306_v50, %v2269_v23  ;;  %v2276_v59 = vmax.f32 %v2244_v6, 0.0  ;;  %v2245_v9 = vadd.f32 %v4142_v52, %v2171_v0  ;;  %v2178_v27 = vadd.f32 %v2045_v47, %v1786_v56  ;;  %v4418_v23 = vld [vmem:[#allocation23_spill] sm:$0xff] }
 0x1c8   : > { %v2047_v37 = vpop.f32.mrf.mxu1  ;;  %v1884_v50 = vadd.f32 %v4104_v28, %v4417_v61  ;;  %v1886_v24 = vadd.f32 %v4107_v63, %v4418_v23  ;;  %v2278_v6 = vmax.f32 %v2246_v36, 0.0 }
 0x1c9   : > { %v2314_v30 = vadd.f32 %v2310_v41, %v2270_v43  ;;  %v2307_v45 = vadd.f32 %v4095_v3, %v2276_v59  ;;  %v2277_v10 = vmax.f32 %v2245_v9, 0.0  ;;  %v2252_v11 = vadd.f32 %v4128_v2, %v2178_v27  ;;  %v4419_v9 = vld [vmem:[#allocation24_spill] sm:$0xff] }
 0x1ca   : > { %v2179_v62 = vadd.f32 %v2047_v37, %v1788_v34  ;;  %v2049_v31 = vpop.f32.mrf.mxu1  ;;  %v2254_v3 = vadd.f32 %v4135_v53, %v2180_v58  ;;  %v1888_v27 = vadd.f32 %v4111_v49, %v4419_v9  ;;  %v2287_v34 = vmax.f32 %v2255_v55, 0.0 }
 0x1cb   : > { %v2311_v42 = vadd.f32 %v2307_v45, %v2277_v10  ;;  %v2284_v8 = vmax.f32 %v2252_v11, 0.0  ;;  %v2186_v17 = vadd.f32 %v2049_v31, %v1790_v60  ;;  %v2318_v5 = vadd.f32 %v2314_v30, %v2271_v33  ;;  %v4420_v10 = vld [vmem:[#allocation25_spill] sm:$0xff] }
 0x1cc   : > { %v2253_v14 = vadd.f32 %v4142_v52, %v2179_v62  ;;  %v2051_v26 = vpop.f32.mrf.mxu1  ;;  %v2286_v43 = vmax.f32 %v2254_v3, 0.0  ;;  %v2189_v11 = vadd.f32 %v2104_v29, %v1845_v21  ;;  %v4424_v9 = vmov 0  }
 0x1cd   : > { %v2308_v15 = vadd.f32 %v4102_v20, %v2284_v8  ;;  %v2260_v56 = vadd.f32 %v4128_v2, %v2186_v17  ;;  %v2187_v18 = vadd.f32 %v2051_v26, %v1792_v54  ;;  %v2247_v20 = vadd.f32 %v4147_v38, %v2173_v57 }
 0x1ce   : > { %v2285_v44 = vmax.f32 %v2253_v14, 0.0  ;;  %v2141_v35 = vpop.f32.mrf.mxu1  ;;  %v2188_v2 = vadd.f32 %v2102_v40, %v1843_v51  ;;  %v2315_v60 = vadd.f32 %v2311_v42, %v2278_v6  ;;  %v4421_v42 = vld [vmem:[#allocation26_spill] sm:$0xff]  ;;  %v2263_v21 = vadd.f32 %v4147_v38, %v2189_v11 }
 0x1cf   : > { %v2292_v0 = vmax.f32 %v2260_v56, 0.0  ;;  %v2261_v1 = vadd.f32 %v4142_v52, %v2187_v18  ;;  %v2166_v25 = vadd.f32 %v2141_v35, %v1882_v39  ;;  %v2279_v45 = vmax.f32 %v2247_v20, 0.0  ;;  %v4422_v39 = vld [vmem:[#allocation27_spill] sm:$0xff] }
 0x1d0   : > { %v2312_v19 = vadd.f32 %v2308_v15, %v2285_v44  ;;  %v2143_v47 = vpop.f32.mrf.mxu1  ;;  %v2262_v7 = vadd.f32 %v4135_v53, %v2188_v2  ;;  %v1894_v8 = vadd.f32 %v4115_v46, %v4421_v42  ;;  %v4423_v46 = vld [vmem:[#allocation28_spill] sm:$0xff]  ;;  %v2295_v35 = vmax.f32 %v2263_v21, 0.0 }
 0x1d1   : > { %v2309_v28 = vadd.f32 %v4109_v22, %v2292_v0  ;;  %v2293_v41 = vmax.f32 %v2261_v1, 0.0  ;;  %v2240_v63 = vadd.f32 %v4158_v4, %v2166_v25  ;;  %v2167_v59 = vadd.f32 %v2143_v47, %v1884_v50 }
 0x1d2   : > { %v2316_v52 = vadd.f32 %v2312_v19, %v2286_v43  ;;  %v2145_v33 = vpop.f32.mrf.mxu1  ;;  %v1892_v22 = vadd.f32 %v4113_v48, %v4420_v10  ;;  %v2319_v26 = vadd.f32 %v2315_v60, %v2279_v45  ;;  %v1896_v48 = vadd.f32 %v4117_v32, %v4422_v39 }
 0x1d3   : > { %v2313_v58 = vadd.f32 %v2309_v28, %v2293_v41  ;;  %v2272_v37 = vmax.f32 %v2240_v63, 0.0  ;;  %v2241_v51 = vadd.f32 %v4163_v13, %v2167_v59  ;;  %v2174_v30 = vadd.f32 %v2145_v33, %v1886_v24 }
 0x1d4   : > { %v2147_v54 = vpop.f32.mrf.mxu1  ;;  %v2320_v36 = vadd.f32 %v2316_v52, %v2287_v34  ;;  %v2294_v40 = vmax.f32 %v2262_v7, 0.0  ;;  %v1898_v61 = vadd.f32 %v4121_v16, %v4423_v46  ;;  %v4426_v52 = vld [vmem:[#allocation19_spill] sm:$0xff] }
 0x1d5   : > { %v2322_v62 = vadd.f32 %v2318_v5, %v2272_v37  ;;  %v2273_v49 = vmax.f32 %v2241_v51, 0.0  ;;  %v2248_v31 = vadd.f32 %v4158_v4, %v2174_v30  ;;  %v2175_v17 = vadd.f32 %v2147_v54, %v1888_v27 }
 0x1d6   : > { %v2151_v57 = vpop.f32.mrf.mxu1  ;;  %v2317_v24 = vadd.f32 %v2313_v58, %v2294_v40  ;;  %v4427_v58 = vld [vmem:[#allocation20_spill] sm:$0xff] }
 0x1d7   : > { %v2326_v3 = vadd.f32 %v2322_v62, %v2273_v49  ;;  %v2280_v14 = vmax.f32 %v2248_v31, 0.0  ;;  %v2182_v12 = vadd.f32 %v2151_v57, %v1892_v22  ;;  %v2249_v53 = vadd.f32 %v4163_v13, %v2175_v17 }
 0x1d8   : > { %v2153_v5 = vpop.f32.mrf.mxu1  ;;  %v2321_v16 = vadd.f32 %v2317_v24, %v2295_v35 }
 0x1d9   : > { %v2323_v15 = vadd.f32 %v2319_v26, %v2280_v14  ;;  %v2256_v56 = vadd.f32 %v4158_v4, %v2182_v12  ;;  %v2183_v18 = vadd.f32 %v2153_v5, %v1894_v8  ;;  %v2281_v50 = vmax.f32 %v2249_v53, 0.0 }
 0x1da   : > { %v2155_v23 = vpop.f32.mrf.mxu1  ;;  %v2330_v43 = vmul.f32 0.0625, %v2326_v3 }
 0x1db   : > { %v2288_v55 = vmax.f32 %v2256_v56, 0.0  ;;  %v2257_v44 = vadd.f32 %v4163_v13, %v2183_v18  ;;  %v2190_v32 = vadd.f32 %v2155_v23, %v1896_v48  ;;  %v2327_v38 = vadd.f32 %v2323_v15, %v2281_v50 }
 0x1dc   : > { %v2157_v6 = vpop.f32.mrf.mxu1 }
 0x1dd   : > { %v2324_v0 = vadd.f32 %v2320_v36, %v2288_v55  ;;  %v2289_v1 = vmax.f32 %v2257_v44, 0.0  ;;  %v2264_v25 = vadd.f32 %v4158_v4, %v2190_v32  ;;  %v2191_v20 = vadd.f32 %v2157_v6, %v1898_v61  ;;  %v2352_v4 = vld [vmem:[%s4425_s5] sm:$0x3] }
 0x1de   : > { %v2331_v2 = vmul.f32 0.0625, %v2327_v38  ;;  %v2357_v33 = vrot.slane %v2352_v4, %v4426_v52  ;;  %v2361_v37 = vrot.slane %v2352_v4, %v4427_v58 }
 0x1df   : > { %v2328_v19 = vadd.f32 %v2324_v0, %v2289_v1  ;;  %v2296_v47 = vmax.f32 %v2264_v25, 0.0  ;;  %v2265_v29 = vadd.f32 %v4163_v13, %v2191_v20 }
 0x1e0   : > { %v2334_v28 = vpack.c.bf16 %v2331_v2, %v2330_v43 }
 0x1e1   : > { %v2325_v41 = vadd.f32 %v2321_v16, %v2296_v47  ;;  %v2297_v63 = vmax.f32 %v2265_v29, 0.0  ;;  %v2332_v27 = vmul.f32 0.0625, %v2328_v19 }
 0x1e2   : > { %2477 = vmatmul.mubr.bf16.vlgmr.msra.gmra.mxu0 %v2334_v28 }
 0x1e3   : > { %v2329_v59 = vadd.f32 %v2325_v41, %v2297_v63  ;;  %2486 = vmatprep.mubr.bf16.mxu0 %v4424_v9 }
 0x1e5   : > { %v2333_v34 = vmul.f32 0.0625, %v2329_v59 }
 0x1e7   : > { %v2335_v60 = vpack.c.bf16 %v2333_v34, %v2332_v27 }
 0x1ea   : > { %2487 = vmatmul.mubr.bf16.gmra.mxu0 %v2335_v60 }
 0x2a2   : > { %v2478_v13 = vpop.f32.mrf.mxu0 }
 0x2a3   : > { %v2479_v51 = vadd.f32 %v2478_v13, %v2357_v33 }
 0x2a4   : > { %v2480_v30 = vpop.f32.mrf.mxu0 }
 0x2a5   : > { %v2497_v45 = vsub.f32 0.0, %v2479_v51  ;;  %v4233_v10 = vadd.f32 %v2480_v30, %v2361_v37 }
 0x2a6   : > { %v2482_v22 = vpop.f32.mrf.mxu0 }
 0x2a7   : > { %v2501_v11 = vmul.f32 1.442695, %v2497_v45  ;;  %v2483_v54 = vadd.f32 %v2482_v22, %v2357_v33 }
 0x2a8   : > { %v2484_v36 = vpop.f32.mrf.mxu0 }
 0x2a9   : > { %3084 = vpow2.f32 %v2501_v11  ;;  %v2498_v7 = vsub.f32 0.0, %v2483_v54  ;;  %v4235_v62 = vadd.f32 %v2484_v36, %v2361_v37 }
 0x2aa   : > { %v2488_v49 = vpop.f32.mrf.mxu0 }
 0x2ab   : > { %v2503_v31 = vmul.f32 1.442695, %v2498_v7  ;;  %v2489_v42 = vadd.f32 %v2488_v49, %v2357_v33 }
 0x2ac   : > { %v2490_v8 = vpop.f32.mrf.mxu0 }
 0x2ad   : > { %3086 = vpow2.f32 %v2503_v31  ;;  %v2499_v17 = vsub.f32 0.0, %v2489_v42  ;;  %v2491_v57 = vadd.f32 %v2490_v8, %v2361_v37 }
 0x2ae   : > { %v2492_v3 = vpop.f32.mrf.mxu0 }
 0x2af   : > { %v2505_v14 = vmul.f32 1.442695, %v2499_v17  ;;  %v2493_v26 = vadd.f32 %v2492_v3, %v2357_v33 }
 0x2b0   : > { %v2494_v12 = vpop.f32.mrf.mxu0 }
 0x2b1   : > { %3088 = vpow2.f32 %v2505_v14  ;;  %v2500_v39 = vsub.f32 0.0, %v2493_v26  ;;  %v2495_v48 = vadd.f32 %v2494_v12, %v2361_v37 }
 0x2b3   : > { %v2507_v21 = vmul.f32 1.442695, %v2500_v39 }
 0x2b5   : > { %3090 = vpow2.f32 %v2507_v21 }
 0x2b6   : > { %v3085_v53 = vpop.eup %3084 }
 0x2b7   : > { %v2509_v5 = vadd.f32 1.0, %v3085_v53 }
 0x2b9   : > { %3092 = vrcp.f32 %v2509_v5 }
 0x2ba   : > { %v3087_v40 = vpop.eup %3086 }
 0x2bb   : > { %v2510_v15 = vadd.f32 1.0, %v3087_v40 }
 0x2bd   : > { %3094 = vrcp.f32 %v2510_v15 }
 0x2be   : > { %v3089_v56 = vpop.eup %3088 }
 0x2bf   : > { %v2511_v18 = vadd.f32 1.0, %v3089_v56 }
 0x2c1   : > { %3096 = vrcp.f32 %v2511_v18 }
 0x2c2   : > { %v3091_v46 = vpop.eup %3090 }
 0x2c3   : > { %v2512_v61 = vadd.f32 1.0, %v3091_v46 }
 0x2c5   : > { %3098 = vrcp.f32 %v2512_v61 }
 0x2c6   : > { %v3093_v50 = vpop.eup %3092 }
 0x2ca   : > { %v3095_v23 = vpop.eup %3094 }
 0x2cb   : > { %v2934_v24 = vpack.c.bf16 %v3095_v23, %v3093_v50 }
 0x2cd   : > { %2935 = vst [vmem:[%s4240_s10] sm:$0xff] %v2934_v24  }
 0x2ce   : > { %v3097_v55 = vpop.eup %3096 }
 0x2d1   : > { %2540 = sbr.rel (%p2918_p1) target bundleno = 729 (0x2d9), region = 52 }
 0x2d2   : > { %v3099_v44 = vpop.eup %3098 }
 0x2d3   : > { %v2939_v32 = vpack.c.bf16 %v3099_v44, %v3097_v55 }
 0x2d5   : > { %2941 = vst [vmem:[%s4240_s10 + $0x8] sm:$0xff] %v2939_v32  }
 0x2d6   : > { %v3294_v35 = vmov -inf   ;;  %v3295_v38 = vmov 0.0  }
 0x2d7   : > { %2541 = vst [vmem:[#allocation2] sm:$0x1] %v3294_v35  ;;  %2542 = vst [vmem:[#allocation3] sm:$0x1] %v3295_v38 }
 0x2d8   : > { %2543 = vst [vmem:[#allocation4] sm:$0x1] %v3295_v38 }
 0x2d9 PF: > { %v2545_v6 = vmax.f32 %v4233_v10, %v4235_v62  ;;  %v2546_v0 = vmax.f32 %v2491_v57, %v2495_v48  ;;  %v4429_v28 = vld [vmem:[#allocation19_spill] sm:$0xff]  ;;  %p2919_p4 = scmp.ne.s32.totalorder %s3272_s30, 1 }
 0x2db   : > { %v2547_v1 = vmax.f32 %v2545_v6, %v2546_v0 }
 0x2dd   : > { %v2548_v25 = vrot.slane %v2547_v1, 4 }
 0x2de   : > { %v2544_v47 = vld [vmem:[#allocation2] sm:$0x1]  ;;  %v2576_v26 = vld [vmem:[#allocation3] sm:$0x1] }
 0x2df   : > { %v2549_v20 = vmax.f32 %v2547_v1, %v2548_v25 }
 0x2e1   : > { %v2550_v43 = vrot.slane %v2549_v20, 2 }
 0x2e3   : > { %v2551_v2 = vmax.f32 %v2549_v20, %v2550_v43 }
 0x2e5   : > { %v2552_v19 = vrot.slane %v2551_v2, 1 }
 0x2e7   : > { %v2553_v16 = vmax.f32 %v2551_v2, %v2552_v19 }
 0x2e9   : > { %v2554_v29 = vmax.f32 %v2544_v47, %v2553_v16 }
 0x2eb   : > { %v2562_v41 = vrot.slane %v2554_v29, %v4429_v28  ;;  %2606 = vst [vmem:[#allocation2] sm:$0x1] %v2554_v29  ;;  %v2555_v33 = vsub.f32 %v2544_v47, %v2554_v29 }
 0x2ed   : > { %v2564_v63 = vsub.f32 %v4233_v10, %v2562_v41  ;;  %v2565_v59 = vsub.f32 %v4235_v62, %v2562_v41  ;;  %v2566_v9 = vsub.f32 %v2491_v57, %v2562_v41  ;;  %v2567_v27 = vsub.f32 %v2495_v48, %v2562_v41  ;;  %v2589_v48 = vld [vmem:[#allocation4] sm:$0x1] }
 0x2ee   : > { %v2556_v58 = vmul.f32 1.442695, %v2555_v33 }
 0x2ef   : > { %v2568_v34 = vmul.f32 1.442695, %v2564_v63  ;;  %v2570_v60 = vmul.f32 1.442695, %v2565_v59  ;;  %v2572_v4 = vmul.f32 1.442695, %v2566_v9 }
 0x2f0   : > { %v2574_v52 = vmul.f32 1.442695, %v2567_v27 }
 0x2f1   : > { %3100 = vpow2.f32 %v2568_v34 }
 0x2f2   : > { %3102 = vpow2.f32 %v2570_v60 }
 0x2f3   : > { %3104 = vpow2.f32 %v2572_v4 }
 0x2f4   : > { %3106 = vpow2.f32 %v2574_v52 }
 0x2f5   : > { %3108 = vpow2.f32 %v2556_v58 }
 0x2fe   : > { %v3101_v37 = vpop.eup %3100 }
 0x2ff   : > { %v3103_v13 = vpop.eup %3102  ;;  %v2591_v51 = vmul.f32 %v3101_v37, %v3093_v50 }
 0x300   : > { %v3105_v30 = vpop.eup %3104  ;;  %v2578_v45 = vadd.f32 %v3103_v13, %v3101_v37  ;;  %v2592_v10 = vmul.f32 %v3103_v13, %v3095_v23 }
 0x301   : > { %v3107_v22 = vpop.eup %3106  ;;  %v2593_v11 = vmul.f32 %v3105_v30, %v3097_v55 }
 0x302   : > { %v2579_v54 = vadd.f32 %v3105_v30, %v2578_v45  ;;  %v2594_v36 = vmul.f32 %v3107_v22, %v3099_v44  ;;  %v2595_v7 = vadd.f32 %v2592_v10, %v2591_v51  ;;  %v3109_v14 = vpop.eup %3108 }
 0x303   : > { %v2577_v21 = vmul.f32 %v3109_v14, %v2576_v26  ;;  %v2590_v15 = vmul.f32 %v3109_v14, %v2589_v48 }
 0x304   : > { %v2580_v62 = vadd.f32 %v3107_v22, %v2579_v54  ;;  %v2596_v49 = vadd.f32 %v2595_v7, %v2593_v11 }
 0x306   : > { %v2581_v31 = vrot.slane %v2580_v62, 4  ;;  %v2597_v42 = vadd.f32 %v2596_v49, %v2594_v36 }
 0x308   : > { %v2582_v8 = vadd.f32 %v2581_v31, %v2580_v62  ;;  %v2598_v17 = vrot.slane %v2597_v42, 4 }
 0x30a   : > { %v2583_v57 = vrot.slane %v2582_v8, 2  ;;  %v2599_v3 = vadd.f32 %v2598_v17, %v2597_v42 }
 0x30c   : > { %v2584_v12 = vadd.f32 %v2583_v57, %v2582_v8  ;;  %v2600_v39 = vrot.slane %v2599_v3, 2 }
 0x30e   : > { %v2585_v53 = vrot.slane %v2584_v12, 1  ;;  %v2601_v5 = vadd.f32 %v2600_v39, %v2599_v3 }
 0x310   : > { %v2586_v40 = vadd.f32 %v2585_v53, %v2584_v12  ;;  %v2602_v56 = vrot.slane %v2601_v5, 1 }
 0x312   : > { %v2587_v18 = vadd.f32 %v2586_v40, %v2577_v21  ;;  %v2603_v46 = vadd.f32 %v2602_v56, %v2601_v5  ;;  %2610 = sbr.rel (%p2919_p4) target bundleno = 813 (0x32d), region = 56 }
 0x314   : > { %2588 = vst [vmem:[#allocation3] sm:$0x1] %v2587_v18  ;;  %v2604_v61 = vadd.f32 %v2603_v46, %v2590_v15 }
 0x316   : > { %2605 = vst [vmem:[#allocation4] sm:$0x1] %v2604_v61 }
 0x31b   : > { %v2612_v50 = vld [vmem:[#allocation3] sm:$0x1] }
 0x31c   : > { %3110 = vrcp.f32 %v2612_v50 }
 0x31d   : > { %v2611_v23 = vld [vmem:[#allocation4] sm:$0x1] }
 0x329   : > { %v3111_v24 = vpop.eup %3110 }
 0x32a   : > { %v2614_v55 = vmul.f32 %v3111_v24, %v2611_v23 }
 0x32c   : > { %2615 = vst [vmem:[%s4246_s2] sm:$0x1] %v2614_v55 }
 0x32d PF: > { %s2922_s17 = sshll.u32 %s3276_s8, 3  ;;  %s2636_s16 = sshll.u32 %s4240_s10, 4  ;;  %s4259_s16 = int_to_ptr.vmem [resolvable:$true] %s2636_s16 }
 0x32e   : > { %s2633_s15 = sadd.s32 %s2922_s17, %s3485_s20  ;;  %s4430_s6 = sld [smem:[#allocation35_spill]] }
 0x32f   : > { %s2923_s21 = sshll.u32 %s2633_s15, 6  ;;  %s4268_s0 = scalar_lea.sflag [#allocation7], %s336_s23 }
 0x330   : > { %s3138_s1 = scalar_lea.vmem %s4259_s16, 256  ;;  %s3296_s20 = smov [#allocation8]  }
 0x331   : > { %p3139_p2 = scmp.ne.s32.totalorder %s4259_s16, %s3138_s1  ;;  %s3142_s10 = sshll.u32 %s3296_s20, 4  ;;  %s3143_s10 = int_to_ptr.vmem [resolvable:$false] %s3142_s10 }
 0x332   : > { %s3144_s17 = scalar_lea.vmem %s3143_s10, 512  ;;  %p3145_p8 = scmp.lt.s32.totalorder %s4259_s16, %s3143_s10 }
 0x333   : > { %p3140_p5 = pnand %p3139_p2, %p3415_p3  ;;  %p3146_p9 = scmp.lt.s32.totalorder %s3144_s17, %s3138_s1 }
 0x334   : > { %s4264_s12 = scalar_lea.hbm %s4430_s6, %s2923_s21 }
 0x335   : > { %p3141_p6 = pneg %p3140_p5  ;;  %p3147_p10 = por %p3146_p9, %p3145_p8 }
 0x337   : > { %p3148_p11 = pnand %p3147_p10, %p3141_p6 }
 0x339   : > { %3151 = shalt.err (!%p3148_p11)
}
 0x33a   : > { %s3152_s23 = scalar_lea.hbm %s4264_s12, 256  ;;  %s3156_s30 = scalar_lea.hbm %s4430_s6, 1024 }
 0x33b   : > { %p3153_p0 = scmp.ne.s32.totalorder %s4264_s12, %s3152_s23  ;;  %p3157_p13 = scmp.lt.s32.totalorder %s4264_s12, %s4430_s6 }
 0x33c   : > { %p3158_p1 = scmp.lt.s32.totalorder %s3156_s30, %s3152_s23 }
 0x33d   : > { %p3154_p7 = pnand %p3153_p0, %p3415_p3 }
 0x33e   : > { %p3159_p4 = por %p3158_p1, %p3157_p13 }
 0x33f   : > { %p3155_p12 = pneg %p3154_p7 }
 0x341   : > { %p3160_p2 = pnand %p3159_p4, %p3155_p12 }
 0x343   : > { %3163 = shalt.err (!%p3160_p2)
}
 0x344   : > { %s3297_s1 = smov 64   ;;  %s3298_s10 = smov 4  }
 0x345   : > { %2946 = dma.vmem_to_hbm [thread:$0]  (%p3415_p3), %s4259_s16, 256, %s4264_s12, %s4268_s0, %s3297_s1, %s3297_s1, %s3298_s10  }
 0x346   : > { %s2924_s17 = sshll.u32 %s3276_s8, 4  ;;  %s2652_s15 = sshll.u32 %s4246_s2, 4  ;;  %s2653_s15 = int_to_ptr.vmem [resolvable:$true] %s2652_s15 }
 0x347   : > { %s2650_s23 = scalar_lea.hbm %s4357_s7, %s2924_s17  ;;  %s4431_s30 = sand.u32 1, %s3252_s25  }
 0x348   : > { %s2622_s20 = scalar_lea.sflag [#allocation10], %s4431_s30  ;;  %s3164_s3 = scalar_lea.vmem %s2653_s15, 16 }
 0x349   : > { %p3165_p5 = scmp.ne.s32.totalorder %s2653_s15, %s3164_s3  ;;  %p4432_p6 = scmp.ne.s32.totalorder %s4390_s13, 0 }
 0x34a   : > { %s3299_s4 = smov [#allocation9]  }
 0x34b   : > { %p3166_p8 = pnand %p3165_p5, %p4432_p6  ;;  %s3168_s5 = sshll.u32 %s3299_s4, 4  ;;  %s3169_s5 = int_to_ptr.vmem [resolvable:$false] %s3168_s5 }
 0x34c   : > { %s3170_s6 = scalar_lea.vmem %s3169_s5, 32  ;;  %p3171_p10 = scmp.lt.s32.totalorder %s2653_s15, %s3169_s5 }
 0x34d   : > { %p3167_p9 = pneg %p3166_p8  ;;  %p3172_p3 = scmp.lt.s32.totalorder %s3170_s6, %s3164_s3 }
 0x34f   : > { %p3173_p11 = por %p3172_p3, %p3171_p10 }
 0x351   : > { %p3174_p0 = pnand %p3173_p11, %p3167_p9 }
 0x353   : > { %3177 = shalt.err (!%p3174_p0)
}
 0x354   : > { %s3178_s0 = scalar_lea.hbm %s2650_s23, 16  ;;  %s3182_s2 = scalar_lea.hbm %s4357_s7, 32 }
 0x355   : > { %p3179_p7 = scmp.ne.s32.totalorder %s2650_s23, %s3178_s0  ;;  %p3183_p1 = scmp.lt.s32.totalorder %s2650_s23, %s4357_s7 }
 0x356   : > { %p3184_p4 = scmp.lt.s32.totalorder %s3182_s2, %s3178_s0 }
 0x357   : > { %p3180_p12 = pnand %p3179_p7, %p4432_p6 }
 0x358   : > { %p3185_p2 = por %p3184_p4, %p3183_p1 }
 0x359   : > { %p3181_p13 = pneg %p3180_p12 }
 0x35b   : > { %p3186_p5 = pnand %p3185_p2, %p3181_p13 }
 0x35d   : > { %3189 = shalt.err (!%p3186_p5)
}
 0x35e   : > { %2947 = dma.vmem_to_hbm [thread:$0]  (%p4432_p6), %s2653_s15, 16, %s2650_s23, %s2622_s20  }
 0x35f PF: > { %s4433_s3 = sld [smem:[#allocation14_spill]]  ;;  %p2963_p8 = scmp.ge.s32.totalorder %s3288_s11, 2 }
 0x360   : > { %p4434_p9 = scmp.ne.s32.totalorder %s4389_s22, 0 }
 0x362   : > { %p2955_p10 = pnand %p2963_p8, %p4434_p9 }
 0x364   : > { %p2956_p3 = pneg %p2955_p10 }
 0x365   : > { %s2664_s4 = sand.u32 1, %s4433_s3  }
 0x366   : > { %s2665_s5 = scalar_lea.sflag [#allocation7], %s2664_s4 }
 0x367   : > { %3239 = dma.done.wait (%p2956_p3), %s2665_s5, 256  }
 0x368   : > { %3241 = vsyncadd (%p2956_p3), %s2665_s5, 4294967040  ;;  %s2673_s6 = sand.u32 1, %s3248_s24   ;;  %p4435_p11 = scmp.ne.s32.totalorder %s4391_s27, 0 }
 0x369   : > { %s2674_s13 = scalar_lea.sflag [#allocation10], %s2673_s6 }
 0x36a   : > { %p2958_p0 = pnand %p2963_p8, %p4435_p11 }
 0x36c   : > { %p2959_p7 = pneg %p2958_p0 }
 0x36e   : > { %3243 = dma.done.wait (%p2959_p7), %s2674_s13, 16  }
 0x36f   : > { %3245 = vsyncadd (%p2959_p7), %s2674_s13, 4294967280  ;;  %s25_s11 = sadd.s32 1, %s3288_s11   ;;  %s4436_s30 = sld [smem:[#allocation15_spill]] }
 0x370   : > { %p22_p6 = scmp.ge.s32.totalorder %s25_s11, 6   ;;  %s4437_s8 = sld [smem:[#allocation16_spill]] }
 0x371   : > { %s4438_s22 = sld [smem:[#allocation17_spill]]  ;;  %s4440_s24 = smov %s3252_s25 }
 0x372   : > { %s4439_s10 = sld [smem:[#allocation18_spill]]  ;;  %s4441_s25 = smov %s3256_s26 }
 0x373   : > { %s4442_s26 = smov %s3447_s14  ;;  %s4443_s27 = smov %s3264_s28 }
 0x374   : > { %s4444_s28 = smov %s3268_s29  ;;  %s4445_s29 = smov %s3450_s9 }
 0x375   :  { %24 = sbr.rel (!%p22_p6) target bundleno = 18 (0x12), region = 114 }
 0x377   : > { %s4446_s9 = smov %s4438_s22 }
 0x37a   :  { %2678 = vsyncpa [#allocation6], 1 }
 0x37b   :  { %2680 = vsyncpa [#allocation6 + $0x1], 1 }
 0x37c   :  { %2681 = vsyncpa [#allocation7], 1 }
 0x37d   :  { %2683 = vsyncpa [#allocation7 + $0x1], 1 }
 0x37e   :  { %2684 = vsyncpa [#allocation10], 1 }
 0x37f   :  { %2686 = vsyncpa [#allocation10 + $0x1], 1 }

</bundles_post_ra>
